<compile_context>
chip_gen: v6e
topology: v6e:2x2x1
jax: 0.10.0
libtpu: 0.0.40
codegen_flags: <defaults>
</compile_context>

<pallas_src>
import jax
import jax.numpy as jnp
from jax import lax
from jax.experimental import pallas as pl
from jax.experimental.pallas import tpu as pltpu

# ---- small ESM-like config -------------------------------------------------
B, S, H = 2, 8, 32          # batch, seq, hidden
NUM_HEADS = 2
HEAD_DIM = H // NUM_HEADS
FFN = 64
NUM_LAYERS = 2
VOCAB = 33
VOCAB_PAD = 128             # pad vocab so the one-hot matmul is lane-dense
LN_EPS = 1e-5
MASK_BIAS = -1e9
BS = B * S                  # flattened rows (batch-major)


# ---- shared in-kernel helper -----------------------------------------------
def _layer_norm(x, g, b):
    mu = jnp.mean(x, axis=-1, keepdims=True)
    var = jnp.mean((x - mu) ** 2, axis=-1, keepdims=True)
    return (x - mu) * lax.rsqrt(var + LN_EPS) * g + b


# ---- one grid step == one encoder layer -------------------------------------
def esm_layer_kernel(ids_ref, mask_row_ref, seg_col_ref, seg_row_ref, len_ref,
                     emb_ref, cos_ref, sin_ref,
                     wproj_ref, bproj_ref, wout_ref, bout_ref,
                     wffi_ref, bffi_ref, wffo_ref, bffo_ref, ln_ref,
                     fln_ref, out_ref, x_ref):
    layer = pl.program_id(0)

    # ---- first step: in-kernel token-embedding gather (one-hot matmul) ----
    @pl.when(layer == 0)
    def _():
        ids = ids_ref[...]                                     # [BS,1] i32, -1 at pads
        onehot = (lax.broadcasted_iota(jnp.int32, (BS, VOCAB_PAD), 1) == ids
                  ).astype(jnp.float32)                        # [BS, VOCAB_PAD]
        # padded rows (id == -1) match nothing -> all-zero embedding row,
        # equivalent to HF's `embeddings * attention_mask` (token-dropout = id).
        x_ref[...] = jnp.dot(onehot, emb_ref[...],
                             preferred_element_type=jnp.float32)

    # block-diagonal key bias + rotary tables rebuilt from tiny resident inputs
    mask_row = mask_row_ref[...]                               # [1, BS] f32
    same_batch = seg_col_ref[...] == seg_row_ref[...]          # [BS, BS] bool
    attn_bias = jnp.where(same_batch & (mask_row > 0.5), 0.0, MASK_BIAS)
    cosf = cos_ref[...]                                        # [BS, HEAD_DIM]
    sinf = sin_ref[...]                                        # [BS, HEAD_DIM]

    x = x_ref[...]                                             # [BS, H] carry
    ln = ln_ref[...]                                           # [4, H]

    # ---- pre-LN rotary self-attention ----
    xn = _layer_norm(x, ln[0:1], ln[1:2])
    attn = bout_ref[...]                                       # [1, H] output bias
    for h in range(NUM_HEADS):                                 # static unroll
        # per-head projections addressed on the leading (stacked) axis: no lane slicing
        q = jnp.dot(xn, wproj_ref[h], preferred_element_type=jnp.float32) + bproj_ref[h]
        k = jnp.dot(xn, wproj_ref[NUM_HEADS + h],
                    preferred_element_type=jnp.float32) + bproj_ref[NUM_HEADS + h]
        v = jnp.dot(xn, wproj_ref[2 * NUM_HEADS + h],
                    preferred_element_type=jnp.float32) + bproj_ref[2 * NUM_HEADS + h]
        # rotate_half pre-composed into weights on host: qr = rotate_half(q)
        qr = jnp.dot(xn, wproj_ref[3 * NUM_HEADS + h],
                     preferred_element_type=jnp.float32) + bproj_ref[3 * NUM_HEADS + h]
        kr = jnp.dot(xn, wproj_ref[4 * NUM_HEADS + h],
                     preferred_element_type=jnp.float32) + bproj_ref[4 * NUM_HEADS + h]
        q = q * cosf + qr * sinf                                # RoPE (scale folded in Wq)
        k = k * cosf + kr * sinf
        s = lax.dot_general(q, k, (((1,), (1,)), ((), ())),
                            preferred_element_type=jnp.float32) + attn_bias
        s = s - jnp.max(s, axis=-1, keepdims=True)
        p = jnp.exp(s)
        p = p * pl.reciprocal(jnp.sum(p, axis=-1, keepdims=True), approx=True)
        ctx = jnp.dot(p, v, preferred_element_type=jnp.float32)             # [BS, HD]
        attn = attn + jnp.dot(ctx, wout_ref[h],
                              preferred_element_type=jnp.float32)           # [BS, H]
    x = x + attn

    # ---- pre-LN feed-forward ----
    xn2 = _layer_norm(x, ln[2:3], ln[3:4])
    h1 = jnp.dot(xn2, wffi_ref[...], preferred_element_type=jnp.float32) + bffi_ref[...]
    # TODO(synk): HF ESM uses exact erf-GELU; tanh-approx GELU used here.
    h1 = jax.nn.gelu(h1, approximate=True)
    x = x + jnp.dot(h1, wffo_ref[...], preferred_element_type=jnp.float32) + bffo_ref[...]
    x_ref[...] = x                                             # carry to next layer

    # ---- last step: final LN + masked-mean pooling, fused ----
    @pl.when(layer == NUM_LAYERS - 1)
    def _():
        fln = fln_ref[...]                                     # [2, H]
        hf = _layer_norm(x, fln[0:1], fln[1:2])
        # pool_w[b, r] = mask[r] if row r belongs to batch b else 0  (in-register)
        pool_w = jnp.where(
            lax.broadcasted_iota(jnp.int32, (B, BS), 0) == seg_row_ref[...],
            mask_row, 0.0)                                     # [B, BS]
        pooled = jnp.dot(pool_w, hf, preferred_element_type=jnp.float32)    # [B, H]
        out_ref[...] = pooled / len_ref[...]                   # exact divide (B scalars)


def run_esm(ids_col, mask_row, seg_col, seg_row, len_col, p):
    const_ops = [ids_col, mask_row, seg_col, seg_row, len_col,
                 p["word_emb"], p["cosf"], p["sinf"]]
    layer_ops = [p["w_proj"], p["b_proj"], p["w_out"], p["b_out"],
                 p["w_ffn_in"], p["b_ffn_in"], p["w_ffn_out"], p["b_ffn_out"],
                 p["ln"]]
    final_ops = [p["final_ln"]]

    def const_spec(a):                       # resident: same block every step
        nd = a.ndim
        return pl.BlockSpec(tuple(a.shape), lambda l, _nd=nd: (0,) * _nd)

    def layer_spec(a):                       # streamed: one layer slab per step
        nd = a.ndim
        return pl.BlockSpec((None,) + tuple(a.shape[1:]),
                            lambda l, _nd=nd: (l,) + (0,) * (_nd - 1))

    in_specs = ([const_spec(a) for a in const_ops]
                + [layer_spec(a) for a in layer_ops]
                + [const_spec(a) for a in final_ops])

    return pl.pallas_call(
        esm_layer_kernel,
        out_shape=jax.ShapeDtypeStruct((B, H), jnp.float32),
        grid_spec=pltpu.PrefetchScalarGridSpec(
            num_scalar_prefetch=0,
            grid=(NUM_LAYERS,),              # layer axis: weights double-buffered
            in_specs=in_specs,
            out_specs=pl.BlockSpec((B, H), lambda l: (0, 0)),
            scratch_shapes=[pltpu.VMEM((BS, H), jnp.float32)]),   # hidden-state carry
        compiler_params=pltpu.CompilerParams(
            dimension_semantics=("arbitrary",)),
    )(*const_ops, *layer_ops, *final_ops)


# ---- parameters / constant tables (baked once; plain JAX glue) ---------------
def rotate_half_matrix():
    # x @ rot == rotate_half(x) = concat([-x[..., HD/2:], x[..., :HD/2]], -1)
    half = HEAD_DIM // 2
    idx = jnp.arange(half)
    rot = jnp.zeros((HEAD_DIM, HEAD_DIM), jnp.float32)
    rot = rot.at[idx + half, idx].set(-1.0)
    rot = rot.at[idx, idx + half].set(1.0)
    return rot


def rotary_tables():
    inv_freq = 1.0 / (10000.0 ** (jnp.arange(0, HEAD_DIM, 2,
                                              dtype=jnp.float32) / HEAD_DIM))
    t = jnp.arange(S, dtype=jnp.float32)
    freqs = jnp.outer(t, inv_freq)                       # [S, HEAD_DIM//2]
    emb = jnp.concatenate([freqs, freqs], axis=-1)       # [S, HEAD_DIM]
    # rows are batch-major flattened: position of row r is r % S
    return jnp.tile(jnp.cos(emb), (B, 1)), jnp.tile(jnp.sin(emb), (B, 1))


def init_params(key):
    def nrm(k, shape):
        return 0.02 * jax.random.normal(k, shape, dtype=jnp.float32)

    rot = rotate_half_matrix()
    scale = 1.0 / (HEAD_DIM ** 0.5)

    keys = jax.random.split(key, 1 + 6 * NUM_LAYERS)
    w_proj, b_proj, w_out, b_out = [], [], [], []
    w_ffi, b_ffi, w_ffo, b_ffo, ln = [], [], [], [], []
    for layer in range(NUM_LAYERS):
        k = keys[1 + 6 * layer: 1 + 6 * (layer + 1)]
        wq, wk, wv, wo = (nrm(k[0], (H, H)), nrm(k[1], (H, H)),
                          nrm(k[2], (H, H)), nrm(k[3], (H, H)))

        def heads(w):
            return [w[:, h * HEAD_DIM:(h + 1) * HEAD_DIM] for h in range(NUM_HEADS)]

        wq_h = [scale * w for w in heads(wq)]            # 1/sqrt(HD) folded into q
        wk_h = heads(wk)
        wv_h = heads(wv)
        wqr_h = [w @ rot for w in wq_h]                  # rotate_half pre-composed
        wkr_h = [w @ rot for w in wk_h]
        w_proj.append(jnp.stack(wq_h + wk_h + wv_h + wqr_h + wkr_h))  # [5*NH, H, HD]
        b_proj.append(jnp.zeros((5 * NUM_HEADS, 1, HEAD_DIM), jnp.float32))
        w_out.append(jnp.stack([wo[h * HEAD_DIM:(h + 1) * HEAD_DIM, :]
                                for h in range(NUM_HEADS)]))          # [NH, HD, H]
        b_out.append(jnp.zeros((1, H), jnp.float32))
        w_ffi.append(nrm(k[4], (H, FFN)))
        b_ffi.append(jnp.zeros((1, FFN), jnp.float32))
        w_ffo.append(nrm(k[5], (FFN, H)))
        b_ffo.append(jnp.zeros((1, H), jnp.float32))
        ln.append(jnp.stack([jnp.ones(H), jnp.zeros(H),
                             jnp.ones(H), jnp.zeros(H)]).astype(jnp.float32))

    word_emb = jnp.zeros((VOCAB_PAD, H), jnp.float32).at[:VOCAB].set(
        nrm(keys[0], (VOCAB, H)))
    cos, sin = rotary_tables()
    return {
        "word_emb": word_emb,                                 # [VOCAB_PAD, H]
        "cosf": cos, "sinf": sin,                             # [BS, HEAD_DIM]
        "w_proj": jnp.stack(w_proj), "b_proj": jnp.stack(b_proj),
        "w_out": jnp.stack(w_out), "b_out": jnp.stack(b_out),
        "w_ffn_in": jnp.stack(w_ffi), "b_ffn_in": jnp.stack(b_ffi),
        "w_ffn_out": jnp.stack(w_ffo), "b_ffn_out": jnp.stack(b_ffo),
        "ln": jnp.stack(ln),
        "final_ln": jnp.stack([jnp.ones(H), jnp.zeros(H)]).astype(jnp.float32),
    }


def esm_forward(params, input_ids, attention_mask, lengths):
    # Only tiny reshapes remain on the host; everything else is in-kernel.
    mask_f = attention_mask.astype(jnp.float32)                        # [B, S]
    # padded positions -> id -1 so their one-hot (and embedding) row is zero
    ids_masked = jnp.where(attention_mask > 0, input_ids, -1)
    ids_col = ids_masked.reshape(BS, 1).astype(jnp.int32)
    mask_row = mask_f.reshape(1, BS)
    seg = jnp.repeat(jnp.arange(B, dtype=jnp.int32), S)                # batch id / row
    seg_col = seg.reshape(BS, 1)
    seg_row = seg.reshape(1, BS)
    len_col = lengths.astype(jnp.float32).reshape(B, 1)
    # NOTE: fully-padded rows attend uniformly (all -1e9 bias); pooled output is
    # still correct because pool_w zeroes those rows.
    return run_esm(ids_col, mask_row, seg_col, seg_row, len_col, params)


if __name__ == "__main__":
    key = jax.random.PRNGKey(0)
    k_param, k_ids = jax.random.split(key)
    params = init_params(k_param)

    lengths = jnp.array([8, 5], dtype=jnp.int32)                       # [B]
    attention_mask = (jnp.arange(S)[None, :] < lengths[:, None]).astype(jnp.int32)
    input_ids = jax.random.randint(k_ids, (B, S), 1, VOCAB, dtype=jnp.int32)
    input_ids = input_ids * attention_mask                             # pad id 0

    out = esm_forward(params, input_ids, attention_mask, lengths)
    out = jax.block_until_ready(out)
    assert out.shape == (B, H) and bool(jnp.all(jnp.isfinite(out)))
    print("KERNEL_OK")
</pallas_src>

<mosaic_0001>
module attributes {stable_mosaic.version = 11 : i64} {
  func.func @esm_layer_kernel(%arg0: i32, %arg1: memref<16x1xi32, #tpu.memory_space<vmem>>, %arg2: memref<1x16xf32, #tpu.memory_space<vmem>>, %arg3: memref<16x1xi32, #tpu.memory_space<vmem>>, %arg4: memref<1x16xi32, #tpu.memory_space<vmem>>, %arg5: memref<2x1xf32, #tpu.memory_space<vmem>>, %arg6: memref<128x32xf32, #tpu.memory_space<vmem>>, %arg7: memref<16x16xf32, #tpu.memory_space<vmem>>, %arg8: memref<16x16xf32, #tpu.memory_space<vmem>>, %arg9: memref<1x10x32x16xf32, #tpu.memory_space<vmem>>, %arg10: memref<1x10x1x16xf32, #tpu.memory_space<vmem>>, %arg11: memref<1x2x16x32xf32, #tpu.memory_space<vmem>>, %arg12: memref<1x1x32xf32, #tpu.memory_space<vmem>>, %arg13: memref<1x32x64xf32, #tpu.memory_space<vmem>>, %arg14: memref<1x1x64xf32, #tpu.memory_space<vmem>>, %arg15: memref<1x64x32xf32, #tpu.memory_space<vmem>>, %arg16: memref<1x1x32xf32, #tpu.memory_space<vmem>>, %arg17: memref<1x4x32xf32, #tpu.memory_space<vmem>>, %arg18: memref<2x32xf32, #tpu.memory_space<vmem>>, %arg19: memref<2x32xf32, #tpu.memory_space<vmem>>, %arg20: memref<16x32xf32, #tpu.memory_space<vmem>>) attributes {dimension_semantics = [#tpu.dimension_semantics<arbitrary>], iteration_bounds = array<i64: 2>, scalar_prefetch = 0 : i64, scratch_operands = 1 : i64, tpu.core_type = #tpu.core_type<tc>, window_params = [{pipeline_mode = #tpu.pipeline_mode<synchronous>, transform_indices = @transform_0, window_bounds = array<i64: 16, 1>}, {pipeline_mode = #tpu.pipeline_mode<synchronous>, transform_indices = @transform_1, window_bounds = array<i64: 1, 16>}, {pipeline_mode = #tpu.pipeline_mode<synchronous>, transform_indices = @transform_2, window_bounds = array<i64: 16, 1>}, {pipeline_mode = #tpu.pipeline_mode<synchronous>, transform_indices = @transform_3, window_bounds = array<i64: 1, 16>}, {pipeline_mode = #tpu.pipeline_mode<synchronous>, transform_indices = @transform_4, window_bounds = array<i64: 2, 1>}, {pipeline_mode = #tpu.pipeline_mode<synchronous>, transform_indices = @transform_5, window_bounds = array<i64: 128, 32>}, {pipeline_mode = #tpu.pipeline_mode<synchronous>, transform_indices = @transform_6, window_bounds = array<i64: 16, 16>}, {pipeline_mode = #tpu.pipeline_mode<synchronous>, transform_indices = @transform_7, window_bounds = array<i64: 16, 16>}, {transform_indices = @transform_8, window_bounds = array<i64: 1, 10, 32, 16>}, {transform_indices = @transform_9, window_bounds = array<i64: 1, 10, 1, 16>}, {transform_indices = @transform_10, window_bounds = array<i64: 1, 2, 16, 32>}, {transform_indices = @transform_11, window_bounds = array<i64: 1, 1, 32>}, {transform_indices = @transform_12, window_bounds = array<i64: 1, 32, 64>}, {transform_indices = @transform_13, window_bounds = array<i64: 1, 1, 64>}, {transform_indices = @transform_14, window_bounds = array<i64: 1, 64, 32>}, {transform_indices = @transform_15, window_bounds = array<i64: 1, 1, 32>}, {transform_indices = @transform_16, window_bounds = array<i64: 1, 4, 32>}, {pipeline_mode = #tpu.pipeline_mode<synchronous>, transform_indices = @transform_17, window_bounds = array<i64: 2, 32>}, {pipeline_mode = #tpu.pipeline_mode<synchronous>, transform_indices = @transform_18, window_bounds = array<i64: 2, 32>}]} {
    %c0_i32 = arith.constant 0 : i32
    %0 = arith.cmpi eq, %arg0, %c0_i32 : i32
    %1 = arith.extui %0 : i1 to i32
    %c0_i32_0 = arith.constant 0 : i32
    %2 = arith.cmpi ne, %1, %c0_i32_0 : i32
    scf.if %2 {
      %c0_150 = arith.constant 0 : index
      %c0_151 = arith.constant 0 : index
      %221 = vector.load %arg1[%c0_150, %c0_151] : memref<16x1xi32, #tpu.memory_space<vmem>>, vector<16x1xi32>
      %222 = tpu.iota {dimensions = array<i32: 1>} : vector<16x128xi32>
      %223 = vector.broadcast %221 : vector<16x1xi32> to vector<16x128xi32>
      %224 = arith.cmpi eq, %222, %223 : vector<16x128xi32>
      %225 = arith.extui %224 : vector<16x128xi1> to vector<16x128xi32>
      %226 = arith.sitofp %225 : vector<16x128xi32> to vector<16x128xf32>
      %c0_152 = arith.constant 0 : index
      %c0_153 = arith.constant 0 : index
      %227 = vector.load %arg6[%c0_152, %c0_153] : memref<128x32xf32, #tpu.memory_space<vmem>>, vector<128x32xf32>
      %cst_154 = arith.constant dense<0.000000e+00> : vector<16x32xf32>
      %228 = tpu.matmul %226, %227, %cst_154 {dimension_numbers = #tpu.dot_dimension_numbers<[1], [0], [0], [1], [0, 0, 1, 1], [], []>} : vector<16x128xf32>, vector<128x32xf32>, vector<16x32xf32> -> vector<16x32xf32>
      %c0_155 = arith.constant 0 : index
      %c0_156 = arith.constant 0 : index
      %229 = vector.load %arg20[%c0_155, %c0_156] : memref<16x32xf32, #tpu.memory_space<vmem>>, vector<16x32xf32>
      tpu.vector_store %arg20[%c0_155, %c0_156], %228 {strides = array<i32>} : memref<16x32xf32, #tpu.memory_space<vmem>>, vector<16x32xf32>,
    } else {
    }
    %c0 = arith.constant 0 : index
    %c0_1 = arith.constant 0 : index
    %3 = vector.load %arg2[%c0, %c0_1] : memref<1x16xf32, #tpu.memory_space<vmem>>, vector<1x16xf32>
    %c0_2 = arith.constant 0 : index
    %c0_3 = arith.constant 0 : index
    %4 = vector.load %arg3[%c0_2, %c0_3] : memref<16x1xi32, #tpu.memory_space<vmem>>, vector<16x1xi32>
    %c0_4 = arith.constant 0 : index
    %c0_5 = arith.constant 0 : index
    %5 = vector.load %arg4[%c0_4, %c0_5] : memref<1x16xi32, #tpu.memory_space<vmem>>, vector<1x16xi32>
    %6 = vector.broadcast %4 : vector<16x1xi32> to vector<16x16xi32>
    %7 = vector.broadcast %5 : vector<1x16xi32> to vector<16x16xi32>
    %8 = arith.cmpi eq, %6, %7 : vector<16x16xi32>
    %cst = arith.constant 5.000000e-01 : f32
    %9 = vector.broadcast %cst : f32 to vector<1x16xf32>
    %10 = arith.cmpf ogt, %3, %9 : vector<1x16xf32>
    %11 = vector.broadcast %10 : vector<1x16xi1> to vector<16x16xi1>
    %12 = arith.andi %8, %11 : vector<16x16xi1>
    %cst_6 = arith.constant 0.000000e+00 : f32
    %cst_7 = arith.constant -1.000000e+09 : f32
    %13 = vector.broadcast %cst_6 : f32 to vector<16x16xf32>
    %14 = vector.broadcast %cst_7 : f32 to vector<16x16xf32>
    %15 = arith.select %12, %13, %14 : vector<16x16xi1>, vector<16x16xf32>
    %c0_8 = arith.constant 0 : index
    %c0_9 = arith.constant 0 : index
    %16 = vector.load %arg7[%c0_8, %c0_9] : memref<16x16xf32, #tpu.memory_space<vmem>>, vector<16x16xf32>
    %c0_10 = arith.constant 0 : index
    %c0_11 = arith.constant 0 : index
    %17 = vector.load %arg8[%c0_10, %c0_11] : memref<16x16xf32, #tpu.memory_space<vmem>>, vector<16x16xf32>
    %c0_12 = arith.constant 0 : index
    %c0_13 = arith.constant 0 : index
    %18 = vector.load %arg20[%c0_12, %c0_13] : memref<16x32xf32, #tpu.memory_space<vmem>>, vector<16x32xf32>
    %c0_14 = arith.constant 0 : index
    %c0_15 = arith.constant 0 : index
    %c0_16 = arith.constant 0 : index
    %19 = vector.load %arg17[%c0_14, %c0_15, %c0_16] : memref<1x4x32xf32, #tpu.memory_space<vmem>>, vector<1x4x32xf32>
    %20 = vector.shape_cast %19 : vector<1x4x32xf32> to vector<4x32xf32>
    %21 = vector.extract_strided_slice %20 {offsets = [0, 0], sizes = [1, 32], strides = [1, 1]} : vector<4x32xf32> to vector<1x32xf32>
    %22 = vector.extract_strided_slice %20 {offsets = [1, 0], sizes = [1, 32], strides = [1, 1]} : vector<4x32xf32> to vector<1x32xf32>
    %cst_17 = arith.constant dense<0.000000e+00> : vector<16xf32>
    %23 = vector.multi_reduction <add>, %18, %cst_17 [1] : vector<16x32xf32> to vector<16xf32>
    %24 = vector.shape_cast %23 : vector<16xf32> to vector<16x1xf32>
    %cst_18 = arith.constant 3.200000e+01 : f32
    %25 = vector.broadcast %cst_18 : f32 to vector<16x1xf32>
    %26 = arith.divf %24, %25 : vector<16x1xf32>
    %27 = vector.broadcast %26 : vector<16x1xf32> to vector<16x32xf32>
    %28 = arith.subf %18, %27 : vector<16x32xf32>
    %29 = arith.mulf %28, %28 : vector<16x32xf32>
    %cst_19 = arith.constant dense<0.000000e+00> : vector<16xf32>
    %30 = vector.multi_reduction <add>, %29, %cst_19 [1] : vector<16x32xf32> to vector<16xf32>
    %31 = vector.shape_cast %30 : vector<16xf32> to vector<16x1xf32>
    %cst_20 = arith.constant 3.200000e+01 : f32
    %32 = vector.broadcast %cst_20 : f32 to vector<16x1xf32>
    %33 = arith.divf %31, %32 : vector<16x1xf32>
    %34 = vector.broadcast %26 : vector<16x1xf32> to vector<16x32xf32>
    %35 = arith.subf %18, %34 : vector<16x32xf32>
    %cst_21 = arith.constant 9.99999974E-6 : f32
    %36 = vector.broadcast %cst_21 : f32 to vector<16x1xf32>
    %37 = arith.addf %33, %36 : vector<16x1xf32>
    %38 = math.rsqrt %37 : vector<16x1xf32>
    %39 = vector.broadcast %38 : vector<16x1xf32> to vector<16x32xf32>
    %40 = arith.mulf %35, %39 : vector<16x32xf32>
    %41 = vector.broadcast %21 : vector<1x32xf32> to vector<16x32xf32>
    %42 = arith.mulf %40, %41 : vector<16x32xf32>
    %43 = vector.broadcast %22 : vector<1x32xf32> to vector<16x32xf32>
    %44 = arith.addf %42, %43 : vector<16x32xf32>
    %c0_22 = arith.constant 0 : index
    %c0_23 = arith.constant 0 : index
    %c0_24 = arith.constant 0 : index
    %45 = vector.load %arg12[%c0_22, %c0_23, %c0_24] : memref<1x1x32xf32, #tpu.memory_space<vmem>>, vector<1x1x32xf32>
    %46 = vector.shape_cast %45 : vector<1x1x32xf32> to vector<1x32xf32>
    %c0_25 = arith.constant 0 : index
    %c0_26 = arith.constant 0 : index
    %c0_27 = arith.constant 0 : index
    %c0_28 = arith.constant 0 : index
    %47 = vector.load %arg9[%c0_25, %c0_26, %c0_27, %c0_28] : memref<1x10x32x16xf32, #tpu.memory_space<vmem>>, vector<1x1x32x16xf32>
    %48 = vector.shape_cast %47 : vector<1x1x32x16xf32> to vector<32x16xf32>
    %cst_29 = arith.constant dense<0.000000e+00> : vector<16x16xf32>
    %49 = tpu.matmul %44, %48, %cst_29 {dimension_numbers = #tpu.dot_dimension_numbers<[1], [0], [0], [1], [0, 0, 1, 1], [], []>} : vector<16x32xf32>, vector<32x16xf32>, vector<16x16xf32> -> vector<16x16xf32>
    %c0_30 = arith.constant 0 : index
    %c0_31 = arith.constant 0 : index
    %c0_32 = arith.constant 0 : index
    %c0_33 = arith.constant 0 : index
    %50 = vector.load %arg10[%c0_30, %c0_31, %c0_32, %c0_33] : memref<1x10x1x16xf32, #tpu.memory_space<vmem>>, vector<1x1x1x16xf32>
    %51 = vector.shape_cast %50 : vector<1x1x1x16xf32> to vector<1x16xf32>
    %52 = vector.broadcast %51 : vector<1x16xf32> to vector<16x16xf32>
    %53 = arith.addf %49, %52 : vector<16x16xf32>
    %c0_34 = arith.constant 0 : index
    %c2 = arith.constant 2 : index
    %c0_35 = arith.constant 0 : index
    %c0_36 = arith.constant 0 : index
    %54 = vector.load %arg9[%c0_34, %c2, %c0_35, %c0_36] : memref<1x10x32x16xf32, #tpu.memory_space<vmem>>, vector<1x1x32x16xf32>
    %55 = vector.shape_cast %54 : vector<1x1x32x16xf32> to vector<32x16xf32>
    %cst_37 = arith.constant dense<0.000000e+00> : vector<16x16xf32>
    %56 = tpu.matmul %44, %55, %cst_37 {dimension_numbers = #tpu.dot_dimension_numbers<[1], [0], [0], [1], [0, 0, 1, 1], [], []>} : vector<16x32xf32>, vector<32x16xf32>, vector<16x16xf32> -> vector<16x16xf32>
    %c0_38 = arith.constant 0 : index
    %c2_39 = arith.constant 2 : index
    %c0_40 = arith.constant 0 : index
    %c0_41 = arith.constant 0 : index
    %57 = vector.load %arg10[%c0_38, %c2_39, %c0_40, %c0_41] : memref<1x10x1x16xf32, #tpu.memory_space<vmem>>, vector<1x1x1x16xf32>
    %58 = vector.shape_cast %57 : vector<1x1x1x16xf32> to vector<1x16xf32>
    %59 = vector.broadcast %58 : vector<1x16xf32> to vector<16x16xf32>
    %60 = arith.addf %56, %59 : vector<16x16xf32>
    %c0_42 = arith.constant 0 : index
    %c4 = arith.constant 4 : index
    %c0_43 = arith.constant 0 : index
    %c0_44 = arith.constant 0 : index
    %61 = vector.load %arg9[%c0_42, %c4, %c0_43, %c0_44] : memref<1x10x32x16xf32, #tpu.memory_space<vmem>>, vector<1x1x32x16xf32>
    %62 = vector.shape_cast %61 : vector<1x1x32x16xf32> to vector<32x16xf32>
    %cst_45 = arith.constant dense<0.000000e+00> : vector<16x16xf32>
    %63 = tpu.matmul %44, %62, %cst_45 {dimension_numbers = #tpu.dot_dimension_numbers<[1], [0], [0], [1], [0, 0, 1, 1], [], []>} : vector<16x32xf32>, vector<32x16xf32>, vector<16x16xf32> -> vector<16x16xf32>
    %c0_46 = arith.constant 0 : index
    %c4_47 = arith.constant 4 : index
    %c0_48 = arith.constant 0 : index
    %c0_49 = arith.constant 0 : index
    %64 = vector.load %arg10[%c0_46, %c4_47, %c0_48, %c0_49] : memref<1x10x1x16xf32, #tpu.memory_space<vmem>>, vector<1x1x1x16xf32>
    %65 = vector.shape_cast %64 : vector<1x1x1x16xf32> to vector<1x16xf32>
    %66 = vector.broadcast %65 : vector<1x16xf32> to vector<16x16xf32>
    %67 = arith.addf %63, %66 : vector<16x16xf32>
    %c0_50 = arith.constant 0 : index
    %c6 = arith.constant 6 : index
    %c0_51 = arith.constant 0 : index
    %c0_52 = arith.constant 0 : index
    %68 = vector.load %arg9[%c0_50, %c6, %c0_51, %c0_52] : memref<1x10x32x16xf32, #tpu.memory_space<vmem>>, vector<1x1x32x16xf32>
    %69 = vector.shape_cast %68 : vector<1x1x32x16xf32> to vector<32x16xf32>
    %cst_53 = arith.constant dense<0.000000e+00> : vector<16x16xf32>
    %70 = tpu.matmul %44, %69, %cst_53 {dimension_numbers = #tpu.dot_dimension_numbers<[1], [0], [0], [1], [0, 0, 1, 1], [], []>} : vector<16x32xf32>, vector<32x16xf32>, vector<16x16xf32> -> vector<16x16xf32>
    %c0_54 = arith.constant 0 : index
    %c6_55 = arith.constant 6 : index
    %c0_56 = arith.constant 0 : index
    %c0_57 = arith.constant 0 : index
    %71 = vector.load %arg10[%c0_54, %c6_55, %c0_56, %c0_57] : memref<1x10x1x16xf32, #tpu.memory_space<vmem>>, vector<1x1x1x16xf32>
    %72 = vector.shape_cast %71 : vector<1x1x1x16xf32> to vector<1x16xf32>
    %73 = vector.broadcast %72 : vector<1x16xf32> to vector<16x16xf32>
    %74 = arith.addf %70, %73 : vector<16x16xf32>
    %c0_58 = arith.constant 0 : index
    %c8 = arith.constant 8 : index
    %c0_59 = arith.constant 0 : index
    %c0_60 = arith.constant 0 : index
    %75 = vector.load %arg9[%c0_58, %c8, %c0_59, %c0_60] : memref<1x10x32x16xf32, #tpu.memory_space<vmem>>, vector<1x1x32x16xf32>
    %76 = vector.shape_cast %75 : vector<1x1x32x16xf32> to vector<32x16xf32>
    %cst_61 = arith.constant dense<0.000000e+00> : vector<16x16xf32>
    %77 = tpu.matmul %44, %76, %cst_61 {dimension_numbers = #tpu.dot_dimension_numbers<[1], [0], [0], [1], [0, 0, 1, 1], [], []>} : vector<16x32xf32>, vector<32x16xf32>, vector<16x16xf32> -> vector<16x16xf32>
    %c0_62 = arith.constant 0 : index
    %c8_63 = arith.constant 8 : index
    %c0_64 = arith.constant 0 : index
    %c0_65 = arith.constant 0 : index
    %78 = vector.load %arg10[%c0_62, %c8_63, %c0_64, %c0_65] : memref<1x10x1x16xf32, #tpu.memory_space<vmem>>, vector<1x1x1x16xf32>
    %79 = vector.shape_cast %78 : vector<1x1x1x16xf32> to vector<1x16xf32>
    %80 = vector.broadcast %79 : vector<1x16xf32> to vector<16x16xf32>
    %81 = arith.addf %77, %80 : vector<16x16xf32>
    %82 = arith.mulf %53, %16 : vector<16x16xf32>
    %83 = arith.mulf %74, %17 : vector<16x16xf32>
    %84 = arith.addf %82, %83 : vector<16x16xf32>
    %85 = arith.mulf %60, %16 : vector<16x16xf32>
    %86 = arith.mulf %81, %17 : vector<16x16xf32>
    %87 = arith.addf %85, %86 : vector<16x16xf32>
    %cst_66 = arith.constant dense<0.000000e+00> : vector<16x16xf32>
    %88 = tpu.matmul %84, %87, %cst_66 {dimension_numbers = #tpu.dot_dimension_numbers<[1], [1], [0], [0], [0, 0, 1, 0], [], []>} : vector<16x16xf32>, vector<16x16xf32>, vector<16x16xf32> -> vector<16x16xf32>
    %89 = arith.addf %88, %15 : vector<16x16xf32>
    %cst_67 = arith.constant dense<0xFF800000> : vector<16xf32>
    %90 = vector.multi_reduction <maximumf>, %89, %cst_67 [1] : vector<16x16xf32> to vector<16xf32>
    %91 = vector.shape_cast %90 : vector<16xf32> to vector<16x1xf32>
    %92 = vector.broadcast %91 : vector<16x1xf32> to vector<16x16xf32>
    %93 = arith.subf %89, %92 : vector<16x16xf32>
    %94 = math.exp %93 : vector<16x16xf32>
    %cst_68 = arith.constant dense<0.000000e+00> : vector<16xf32>
    %95 = vector.multi_reduction <add>, %94, %cst_68 [1] : vector<16x16xf32> to vector<16xf32>
    %96 = vector.shape_cast %95 : vector<16xf32> to vector<16x1xf32>
    %97 = tpu.reciprocal %96 {approx = true} : vector<16x1xf32> -> vector<16x1xf32>
    %98 = vector.broadcast %97 : vector<16x1xf32> to vector<16x16xf32>
    %99 = arith.mulf %94, %98 : vector<16x16xf32>
    %cst_69 = arith.constant dense<0.000000e+00> : vector<16x16xf32>
    %100 = tpu.matmul %99, %67, %cst_69 {dimension_numbers = #tpu.dot_dimension_numbers<[1], [0], [0], [1], [0, 0, 1, 1], [], []>} : vector<16x16xf32>, vector<16x16xf32>, vector<16x16xf32> -> vector<16x16xf32>
    %c0_70 = arith.constant 0 : index
    %c0_71 = arith.constant 0 : index
    %c0_72 = arith.constant 0 : index
    %c0_73 = arith.constant 0 : index
    %101 = vector.load %arg11[%c0_70, %c0_71, %c0_72, %c0_73] : memref<1x2x16x32xf32, #tpu.memory_space<vmem>>, vector<1x1x16x32xf32>
    %102 = vector.shape_cast %101 : vector<1x1x16x32xf32> to vector<16x32xf32>
    %cst_74 = arith.constant dense<0.000000e+00> : vector<16x32xf32>
    %103 = tpu.matmul %100, %102, %cst_74 {dimension_numbers = #tpu.dot_dimension_numbers<[1], [0], [0], [1], [0, 0, 1, 1], [], []>} : vector<16x16xf32>, vector<16x32xf32>, vector<16x32xf32> -> vector<16x32xf32>
    %104 = vector.broadcast %46 : vector<1x32xf32> to vector<16x32xf32>
    %105 = arith.addf %104, %103 : vector<16x32xf32>
    %c0_75 = arith.constant 0 : index
    %c1 = arith.constant 1 : index
    %c0_76 = arith.constant 0 : index
    %c0_77 = arith.constant 0 : index
    %106 = vector.load %arg9[%c0_75, %c1, %c0_76, %c0_77] : memref<1x10x32x16xf32, #tpu.memory_space<vmem>>, vector<1x1x32x16xf32>
    %107 = vector.shape_cast %106 : vector<1x1x32x16xf32> to vector<32x16xf32>
    %cst_78 = arith.constant dense<0.000000e+00> : vector<16x16xf32>
    %108 = tpu.matmul %44, %107, %cst_78 {dimension_numbers = #tpu.dot_dimension_numbers<[1], [0], [0], [1], [0, 0, 1, 1], [], []>} : vector<16x32xf32>, vector<32x16xf32>, vector<16x16xf32> -> vector<16x16xf32>
    %c0_79 = arith.constant 0 : index
    %c1_80 = arith.constant 1 : index
    %c0_81 = arith.constant 0 : index
    %c0_82 = arith.constant 0 : index
    %109 = vector.load %arg10[%c0_79, %c1_80, %c0_81, %c0_82] : memref<1x10x1x16xf32, #tpu.memory_space<vmem>>, vector<1x1x1x16xf32>
    %110 = vector.shape_cast %109 : vector<1x1x1x16xf32> to vector<1x16xf32>
    %111 = vector.broadcast %110 : vector<1x16xf32> to vector<16x16xf32>
    %112 = arith.addf %108, %111 : vector<16x16xf32>
    %c0_83 = arith.constant 0 : index
    %c3 = arith.constant 3 : index
    %c0_84 = arith.constant 0 : index
    %c0_85 = arith.constant 0 : index
    %113 = vector.load %arg9[%c0_83, %c3, %c0_84, %c0_85] : memref<1x10x32x16xf32, #tpu.memory_space<vmem>>, vector<1x1x32x16xf32>
    %114 = vector.shape_cast %113 : vector<1x1x32x16xf32> to vector<32x16xf32>
    %cst_86 = arith.constant dense<0.000000e+00> : vector<16x16xf32>
    %115 = tpu.matmul %44, %114, %cst_86 {dimension_numbers = #tpu.dot_dimension_numbers<[1], [0], [0], [1], [0, 0, 1, 1], [], []>} : vector<16x32xf32>, vector<32x16xf32>, vector<16x16xf32> -> vector<16x16xf32>
    %c0_87 = arith.constant 0 : index
    %c3_88 = arith.constant 3 : index
    %c0_89 = arith.constant 0 : index
    %c0_90 = arith.constant 0 : index
    %116 = vector.load %arg10[%c0_87, %c3_88, %c0_89, %c0_90] : memref<1x10x1x16xf32, #tpu.memory_space<vmem>>, vector<1x1x1x16xf32>
    %117 = vector.shape_cast %116 : vector<1x1x1x16xf32> to vector<1x16xf32>
    %118 = vector.broadcast %117 : vector<1x16xf32> to vector<16x16xf32>
    %119 = arith.addf %115, %118 : vector<16x16xf32>
    %c0_91 = arith.constant 0 : index
    %c5 = arith.constant 5 : index
    %c0_92 = arith.constant 0 : index
    %c0_93 = arith.constant 0 : index
    %120 = vector.load %arg9[%c0_91, %c5, %c0_92, %c0_93] : memref<1x10x32x16xf32, #tpu.memory_space<vmem>>, vector<1x1x32x16xf32>
    %121 = vector.shape_cast %120 : vector<1x1x32x16xf32> to vector<32x16xf32>
    %cst_94 = arith.constant dense<0.000000e+00> : vector<16x16xf32>
    %122 = tpu.matmul %44, %121, %cst_94 {dimension_numbers = #tpu.dot_dimension_numbers<[1], [0], [0], [1], [0, 0, 1, 1], [], []>} : vector<16x32xf32>, vector<32x16xf32>, vector<16x16xf32> -> vector<16x16xf32>
    %c0_95 = arith.constant 0 : index
    %c5_96 = arith.constant 5 : index
    %c0_97 = arith.constant 0 : index
    %c0_98 = arith.constant 0 : index
    %123 = vector.load %arg10[%c0_95, %c5_96, %c0_97, %c0_98] : memref<1x10x1x16xf32, #tpu.memory_space<vmem>>, vector<1x1x1x16xf32>
    %124 = vector.shape_cast %123 : vector<1x1x1x16xf32> to vector<1x16xf32>
    %125 = vector.broadcast %124 : vector<1x16xf32> to vector<16x16xf32>
    %126 = arith.addf %122, %125 : vector<16x16xf32>
    %c0_99 = arith.constant 0 : index
    %c7 = arith.constant 7 : index
    %c0_100 = arith.constant 0 : index
    %c0_101 = arith.constant 0 : index
    %127 = vector.load %arg9[%c0_99, %c7, %c0_100, %c0_101] : memref<1x10x32x16xf32, #tpu.memory_space<vmem>>, vector<1x1x32x16xf32>
    %128 = vector.shape_cast %127 : vector<1x1x32x16xf32> to vector<32x16xf32>
    %cst_102 = arith.constant dense<0.000000e+00> : vector<16x16xf32>
    %129 = tpu.matmul %44, %128, %cst_102 {dimension_numbers = #tpu.dot_dimension_numbers<[1], [0], [0], [1], [0, 0, 1, 1], [], []>} : vector<16x32xf32>, vector<32x16xf32>, vector<16x16xf32> -> vector<16x16xf32>
    %c0_103 = arith.constant 0 : index
    %c7_104 = arith.constant 7 : index
    %c0_105 = arith.constant 0 : index
    %c0_106 = arith.constant 0 : index
    %130 = vector.load %arg10[%c0_103, %c7_104, %c0_105, %c0_106] : memref<1x10x1x16xf32, #tpu.memory_space<vmem>>, vector<1x1x1x16xf32>
    %131 = vector.shape_cast %130 : vector<1x1x1x16xf32> to vector<1x16xf32>
    %132 = vector.broadcast %131 : vector<1x16xf32> to vector<16x16xf32>
    %133 = arith.addf %129, %132 : vector<16x16xf32>
    %c0_107 = arith.constant 0 : index
    %c9 = arith.constant 9 : index
    %c0_108 = arith.constant 0 : index
    %c0_109 = arith.constant 0 : index
    %134 = vector.load %arg9[%c0_107, %c9, %c0_108, %c0_109] : memref<1x10x32x16xf32, #tpu.memory_space<vmem>>, vector<1x1x32x16xf32>
    %135 = vector.shape_cast %134 : vector<1x1x32x16xf32> to vector<32x16xf32>
    %cst_110 = arith.constant dense<0.000000e+00> : vector<16x16xf32>
    %136 = tpu.matmul %44, %135, %cst_110 {dimension_numbers = #tpu.dot_dimension_numbers<[1], [0], [0], [1], [0, 0, 1, 1], [], []>} : vector<16x32xf32>, vector<32x16xf32>, vector<16x16xf32> -> vector<16x16xf32>
    %c0_111 = arith.constant 0 : index
    %c9_112 = arith.constant 9 : index
    %c0_113 = arith.constant 0 : index
    %c0_114 = arith.constant 0 : index
    %137 = vector.load %arg10[%c0_111, %c9_112, %c0_113, %c0_114] : memref<1x10x1x16xf32, #tpu.memory_space<vmem>>, vector<1x1x1x16xf32>
    %138 = vector.shape_cast %137 : vector<1x1x1x16xf32> to vector<1x16xf32>
    %139 = vector.broadcast %138 : vector<1x16xf32> to vector<16x16xf32>
    %140 = arith.addf %136, %139 : vector<16x16xf32>
    %141 = arith.mulf %112, %16 : vector<16x16xf32>
    %142 = arith.mulf %133, %17 : vector<16x16xf32>
    %143 = arith.addf %141, %142 : vector<16x16xf32>
    %144 = arith.mulf %119, %16 : vector<16x16xf32>
    %145 = arith.mulf %140, %17 : vector<16x16xf32>
    %146 = arith.addf %144, %145 : vector<16x16xf32>
    %cst_115 = arith.constant dense<0.000000e+00> : vector<16x16xf32>
    %147 = tpu.matmul %143, %146, %cst_115 {dimension_numbers = #tpu.dot_dimension_numbers<[1], [1], [0], [0], [0, 0, 1, 0], [], []>} : vector<16x16xf32>, vector<16x16xf32>, vector<16x16xf32> -> vector<16x16xf32>
    %148 = arith.addf %147, %15 : vector<16x16xf32>
    %cst_116 = arith.constant dense<0xFF800000> : vector<16xf32>
    %149 = vector.multi_reduction <maximumf>, %148, %cst_116 [1] : vector<16x16xf32> to vector<16xf32>
    %150 = vector.shape_cast %149 : vector<16xf32> to vector<16x1xf32>
    %151 = vector.broadcast %150 : vector<16x1xf32> to vector<16x16xf32>
    %152 = arith.subf %148, %151 : vector<16x16xf32>
    %153 = math.exp %152 : vector<16x16xf32>
    %cst_117 = arith.constant dense<0.000000e+00> : vector<16xf32>
    %154 = vector.multi_reduction <add>, %153, %cst_117 [1] : vector<16x16xf32> to vector<16xf32>
    %155 = vector.shape_cast %154 : vector<16xf32> to vector<16x1xf32>
    %156 = tpu.reciprocal %155 {approx = true} : vector<16x1xf32> -> vector<16x1xf32>
    %157 = vector.broadcast %156 : vector<16x1xf32> to vector<16x16xf32>
    %158 = arith.mulf %153, %157 : vector<16x16xf32>
    %cst_118 = arith.constant dense<0.000000e+00> : vector<16x16xf32>
    %159 = tpu.matmul %158, %126, %cst_118 {dimension_numbers = #tpu.dot_dimension_numbers<[1], [0], [0], [1], [0, 0, 1, 1], [], []>} : vector<16x16xf32>, vector<16x16xf32>, vector<16x16xf32> -> vector<16x16xf32>
    %c0_119 = arith.constant 0 : index
    %c1_120 = arith.constant 1 : index
    %c0_121 = arith.constant 0 : index
    %c0_122 = arith.constant 0 : index
    %160 = vector.load %arg11[%c0_119, %c1_120, %c0_121, %c0_122] : memref<1x2x16x32xf32, #tpu.memory_space<vmem>>, vector<1x1x16x32xf32>
    %161 = vector.shape_cast %160 : vector<1x1x16x32xf32> to vector<16x32xf32>
    %cst_123 = arith.constant dense<0.000000e+00> : vector<16x32xf32>
    %162 = tpu.matmul %159, %161, %cst_123 {dimension_numbers = #tpu.dot_dimension_numbers<[1], [0], [0], [1], [0, 0, 1, 1], [], []>} : vector<16x16xf32>, vector<16x32xf32>, vector<16x32xf32> -> vector<16x32xf32>
    %163 = arith.addf %105, %162 : vector<16x32xf32>
    %164 = arith.addf %18, %163 : vector<16x32xf32>
    %165 = vector.extract_strided_slice %20 {offsets = [2, 0], sizes = [1, 32], strides = [1, 1]} : vector<4x32xf32> to vector<1x32xf32>
    %166 = vector.extract_strided_slice %20 {offsets = [3, 0], sizes = [1, 32], strides = [1, 1]} : vector<4x32xf32> to vector<1x32xf32>
    %cst_124 = arith.constant dense<0.000000e+00> : vector<16xf32>
    %167 = vector.multi_reduction <add>, %164, %cst_124 [1] : vector<16x32xf32> to vector<16xf32>
    %168 = vector.shape_cast %167 : vector<16xf32> to vector<16x1xf32>
    %cst_125 = arith.constant 3.200000e+01 : f32
    %169 = vector.broadcast %cst_125 : f32 to vector<16x1xf32>
    %170 = arith.divf %168, %169 : vector<16x1xf32>
    %171 = vector.broadcast %170 : vector<16x1xf32> to vector<16x32xf32>
    %172 = arith.subf %164, %171 : vector<16x32xf32>
    %173 = arith.mulf %172, %172 : vector<16x32xf32>
    %cst_126 = arith.constant dense<0.000000e+00> : vector<16xf32>
    %174 = vector.multi_reduction <add>, %173, %cst_126 [1] : vector<16x32xf32> to vector<16xf32>
    %175 = vector.shape_cast %174 : vector<16xf32> to vector<16x1xf32>
    %cst_127 = arith.constant 3.200000e+01 : f32
    %176 = vector.broadcast %cst_127 : f32 to vector<16x1xf32>
    %177 = arith.divf %175, %176 : vector<16x1xf32>
    %178 = vector.broadcast %170 : vector<16x1xf32> to vector<16x32xf32>
    %179 = arith.subf %164, %178 : vector<16x32xf32>
    %cst_128 = arith.constant 9.99999974E-6 : f32
    %180 = vector.broadcast %cst_128 : f32 to vector<16x1xf32>
    %181 = arith.addf %177, %180 : vector<16x1xf32>
    %182 = math.rsqrt %181 : vector<16x1xf32>
    %183 = vector.broadcast %182 : vector<16x1xf32> to vector<16x32xf32>
    %184 = arith.mulf %179, %183 : vector<16x32xf32>
    %185 = vector.broadcast %165 : vector<1x32xf32> to vector<16x32xf32>
    %186 = arith.mulf %184, %185 : vector<16x32xf32>
    %187 = vector.broadcast %166 : vector<1x32xf32> to vector<16x32xf32>
    %188 = arith.addf %186, %187 : vector<16x32xf32>
    %c0_129 = arith.constant 0 : index
    %c0_130 = arith.constant 0 : index
    %c0_131 = arith.constant 0 : index
    %189 = vector.load %arg13[%c0_129, %c0_130, %c0_131] : memref<1x32x64xf32, #tpu.memory_space<vmem>>, vector<1x32x64xf32>
    %190 = vector.shape_cast %189 : vector<1x32x64xf32> to vector<32x64xf32>
    %cst_132 = arith.constant dense<0.000000e+00> : vector<16x64xf32>
    %191 = tpu.matmul %188, %190, %cst_132 {dimension_numbers = #tpu.dot_dimension_numbers<[1], [0], [0], [1], [0, 0, 1, 1], [], []>} : vector<16x32xf32>, vector<32x64xf32>, vector<16x64xf32> -> vector<16x64xf32>
    %c0_133 = arith.constant 0 : index
    %c0_134 = arith.constant 0 : index
    %c0_135 = arith.constant 0 : index
    %192 = vector.load %arg14[%c0_133, %c0_134, %c0_135] : memref<1x1x64xf32, #tpu.memory_space<vmem>>, vector<1x1x64xf32>
    %193 = vector.shape_cast %192 : vector<1x1x64xf32> to vector<1x64xf32>
    %194 = vector.broadcast %193 : vector<1x64xf32> to vector<16x64xf32>
    %195 = arith.addf %191, %194 : vector<16x64xf32>
    %196 = arith.mulf %195, %195 : vector<16x64xf32>
    %197 = arith.mulf %195, %196 : vector<16x64xf32>
    %cst_136 = arith.constant 4.471500e-02 : f32
    %198 = vector.broadcast %cst_136 : f32 to vector<16x64xf32>
    %199 = arith.mulf %198, %197 : vector<16x64xf32>
    %200 = arith.addf %195, %199 : vector<16x64xf32>
    %cst_137 = arith.constant 0.797884583 : f32
    %201 = vector.broadcast %cst_137 : f32 to vector<16x64xf32>
    %202 = arith.mulf %201, %200 : vector<16x64xf32>
    %203 = math.tanh %202 : vector<16x64xf32>
    %cst_138 = arith.constant 1.000000e+00 : f32
    %204 = vector.broadcast %cst_138 : f32 to vector<16x64xf32>
    %205 = arith.addf %204, %203 : vector<16x64xf32>
    %cst_139 = arith.constant 5.000000e-01 : f32
    %206 = vector.broadcast %cst_139 : f32 to vector<16x64xf32>
    %207 = arith.mulf %206, %205 : vector<16x64xf32>
    %208 = arith.mulf %195, %207 : vector<16x64xf32>
    %c0_140 = arith.constant 0 : index
    %c0_141 = arith.constant 0 : index
    %c0_142 = arith.constant 0 : index
    %209 = vector.load %arg15[%c0_140, %c0_141, %c0_142] : memref<1x64x32xf32, #tpu.memory_space<vmem>>, vector<1x64x32xf32>
    %210 = vector.shape_cast %209 : vector<1x64x32xf32> to vector<64x32xf32>
    %cst_143 = arith.constant dense<0.000000e+00> : vector<16x32xf32>
    %211 = tpu.matmul %208, %210, %cst_143 {dimension_numbers = #tpu.dot_dimension_numbers<[1], [0], [0], [1], [0, 0, 1, 1], [], []>} : vector<16x64xf32>, vector<64x32xf32>, vector<16x32xf32> -> vector<16x32xf32>
    %212 = arith.addf %164, %211 : vector<16x32xf32>
    %c0_144 = arith.constant 0 : index
    %c0_145 = arith.constant 0 : index
    %c0_146 = arith.constant 0 : index
    %213 = vector.load %arg16[%c0_144, %c0_145, %c0_146] : memref<1x1x32xf32, #tpu.memory_space<vmem>>, vector<1x1x32xf32>
    %214 = vector.shape_cast %213 : vector<1x1x32xf32> to vector<1x32xf32>
    %215 = vector.broadcast %214 : vector<1x32xf32> to vector<16x32xf32>
    %216 = arith.addf %212, %215 : vector<16x32xf32>
    %c0_147 = arith.constant 0 : index
    %c0_148 = arith.constant 0 : index
    %217 = vector.load %arg20[%c0_147, %c0_148] : memref<16x32xf32, #tpu.memory_space<vmem>>, vector<16x32xf32>
    tpu.vector_store %arg20[%c0_147, %c0_148], %216 {strides = array<i32>} : memref<16x32xf32, #tpu.memory_space<vmem>>, vector<16x32xf32>,
    %c1_i32 = arith.constant 1 : i32
    %218 = arith.cmpi eq, %arg0, %c1_i32 : i32
    %219 = arith.extui %218 : i1 to i32
    %c0_i32_149 = arith.constant 0 : i32
    %220 = arith.cmpi ne, %219, %c0_i32_149 : i32
    scf.if %220 {
      %c0_150 = arith.constant 0 : index
      %c0_151 = arith.constant 0 : index
      %221 = vector.load %arg18[%c0_150, %c0_151] : memref<2x32xf32, #tpu.memory_space<vmem>>, vector<2x32xf32>
      %222 = vector.extract_strided_slice %221 {offsets = [0, 0], sizes = [1, 32], strides = [1, 1]} : vector<2x32xf32> to vector<1x32xf32>
      %223 = vector.extract_strided_slice %221 {offsets = [1, 0], sizes = [1, 32], strides = [1, 1]} : vector<2x32xf32> to vector<1x32xf32>
      %cst_152 = arith.constant dense<0.000000e+00> : vector<16xf32>
      %224 = vector.multi_reduction <add>, %216, %cst_152 [1] : vector<16x32xf32> to vector<16xf32>
      %225 = vector.shape_cast %224 : vector<16xf32> to vector<16x1xf32>
      %cst_153 = arith.constant 3.200000e+01 : f32
      %226 = vector.broadcast %cst_153 : f32 to vector<16x1xf32>
      %227 = arith.divf %225, %226 : vector<16x1xf32>
      %228 = vector.broadcast %227 : vector<16x1xf32> to vector<16x32xf32>
      %229 = arith.subf %216, %228 : vector<16x32xf32>
      %230 = arith.mulf %229, %229 : vector<16x32xf32>
      %cst_154 = arith.constant dense<0.000000e+00> : vector<16xf32>
      %231 = vector.multi_reduction <add>, %230, %cst_154 [1] : vector<16x32xf32> to vector<16xf32>
      %232 = vector.shape_cast %231 : vector<16xf32> to vector<16x1xf32>
      %cst_155 = arith.constant 3.200000e+01 : f32
      %233 = vector.broadcast %cst_155 : f32 to vector<16x1xf32>
      %234 = arith.divf %232, %233 : vector<16x1xf32>
      %235 = vector.broadcast %227 : vector<16x1xf32> to vector<16x32xf32>
      %236 = arith.subf %216, %235 : vector<16x32xf32>
      %cst_156 = arith.constant 9.99999974E-6 : f32
      %237 = vector.broadcast %cst_156 : f32 to vector<16x1xf32>
      %238 = arith.addf %234, %237 : vector<16x1xf32>
      %239 = math.rsqrt %238 : vector<16x1xf32>
      %240 = vector.broadcast %239 : vector<16x1xf32> to vector<16x32xf32>
      %241 = arith.mulf %236, %240 : vector<16x32xf32>
      %242 = vector.broadcast %222 : vector<1x32xf32> to vector<16x32xf32>
      %243 = arith.mulf %241, %242 : vector<16x32xf32>
      %244 = vector.broadcast %223 : vector<1x32xf32> to vector<16x32xf32>
      %245 = arith.addf %243, %244 : vector<16x32xf32>
      %246 = tpu.iota {dimensions = array<i32: 0>} : vector<2x16xi32>
      %c0_157 = arith.constant 0 : index
      %c0_158 = arith.constant 0 : index
      %247 = vector.load %arg4[%c0_157, %c0_158] : memref<1x16xi32, #tpu.memory_space<vmem>>, vector<1x16xi32>
      %248 = vector.broadcast %247 : vector<1x16xi32> to vector<2x16xi32>
      %249 = arith.cmpi eq, %246, %248 : vector<2x16xi32>
      %cst_159 = arith.constant 0.000000e+00 : f32
      %250 = vector.shape_cast %3 : vector<1x16xf32> to vector<1x16xf32>
      %251 = vector.broadcast %250 : vector<1x16xf32> to vector<2x16xf32>
      %252 = vector.broadcast %cst_159 : f32 to vector<2x16xf32>
      %253 = arith.select %249, %251, %252 : vector<2x16xi1>, vector<2x16xf32>
      %cst_160 = arith.constant dense<0.000000e+00> : vector<2x32xf32>
      %254 = tpu.matmul %253, %245, %cst_160 {dimension_numbers = #tpu.dot_dimension_numbers<[1], [0], [0], [1], [0, 0, 1, 1], [], []>} : vector<2x16xf32>, vector<16x32xf32>, vector<2x32xf32> -> vector<2x32xf32>
      %c0_161 = arith.constant 0 : index
      %c0_162 = arith.constant 0 : index
      %255 = vector.load %arg5[%c0_161, %c0_162] : memref<2x1xf32, #tpu.memory_space<vmem>>, vector<2x1xf32>
      %256 = vector.broadcast %255 : vector<2x1xf32> to vector<2x32xf32>
      %257 = arith.divf %254, %256 : vector<2x32xf32>
      %c0_163 = arith.constant 0 : index
      %c0_164 = arith.constant 0 : index
      %258 = vector.load %arg19[%c0_163, %c0_164] : memref<2x32xf32, #tpu.memory_space<vmem>>, vector<2x32xf32>
      tpu.vector_store %arg19[%c0_163, %c0_164], %257 {strides = array<i32>} : memref<2x32xf32, #tpu.memory_space<vmem>>, vector<2x32xf32>,
    } else {
    }
    return
  }
  func.func @transform_0(%arg0: i32) -> (i32, i32) {
    %c0_i32 = arith.constant 0 : i32
    %c0_i32_0 = arith.constant 0 : i32
    %c0_i32_1 = arith.constant 0 : i32
    return %c0_i32, %c0_i32_0 : i32, i32
  }
  func.func @transform_1(%arg0: i32) -> (i32, i32) {
    %c0_i32 = arith.constant 0 : i32
    %c0_i32_0 = arith.constant 0 : i32
    %c0_i32_1 = arith.constant 0 : i32
    return %c0_i32, %c0_i32_0 : i32, i32
  }
  func.func @transform_2(%arg0: i32) -> (i32, i32) {
    %c0_i32 = arith.constant 0 : i32
    %c0_i32_0 = arith.constant 0 : i32
    %c0_i32_1 = arith.constant 0 : i32
    return %c0_i32, %c0_i32_0 : i32, i32
  }
  func.func @transform_3(%arg0: i32) -> (i32, i32) {
    %c0_i32 = arith.constant 0 : i32
    %c0_i32_0 = arith.constant 0 : i32
    %c0_i32_1 = arith.constant 0 : i32
    return %c0_i32, %c0_i32_0 : i32, i32
  }
  func.func @transform_4(%arg0: i32) -> (i32, i32) {
    %c0_i32 = arith.constant 0 : i32
    %c0_i32_0 = arith.constant 0 : i32
    %c0_i32_1 = arith.constant 0 : i32
    return %c0_i32, %c0_i32_0 : i32, i32
  }
  func.func @transform_5(%arg0: i32) -> (i32, i32) {
    %c0_i32 = arith.constant 0 : i32
    %c0_i32_0 = arith.constant 0 : i32
    %c0_i32_1 = arith.constant 0 : i32
    return %c0_i32, %c0_i32_0 : i32, i32
  }
  func.func @transform_6(%arg0: i32) -> (i32, i32) {
    %c0_i32 = arith.constant 0 : i32
    %c0_i32_0 = arith.constant 0 : i32
    %c0_i32_1 = arith.constant 0 : i32
    return %c0_i32, %c0_i32_0 : i32, i32
  }
  func.func @transform_7(%arg0: i32) -> (i32, i32) {
    %c0_i32 = arith.constant 0 : i32
    %c0_i32_0 = arith.constant 0 : i32
    %c0_i32_1 = arith.constant 0 : i32
    return %c0_i32, %c0_i32_0 : i32, i32
  }
  func.func @transform_8(%arg0: i32) -> (i32, i32, i32, i32) {
    %c0_i32 = arith.constant 0 : i32
    %c0_i32_0 = arith.constant 0 : i32
    %c0_i32_1 = arith.constant 0 : i32
    %c0_i32_2 = arith.constant 0 : i32
    return %arg0, %c0_i32, %c0_i32_0, %c0_i32_1 : i32, i32, i32, i32
  }
  func.func @transform_9(%arg0: i32) -> (i32, i32, i32, i32) {
    %c0_i32 = arith.constant 0 : i32
    %c0_i32_0 = arith.constant 0 : i32
    %c0_i32_1 = arith.constant 0 : i32
    %c0_i32_2 = arith.constant 0 : i32
    return %arg0, %c0_i32, %c0_i32_0, %c0_i32_1 : i32, i32, i32, i32
  }
  func.func @transform_10(%arg0: i32) -> (i32, i32, i32, i32) {
    %c0_i32 = arith.constant 0 : i32
    %c0_i32_0 = arith.constant 0 : i32
    %c0_i32_1 = arith.constant 0 : i32
    %c0_i32_2 = arith.constant 0 : i32
    return %arg0, %c0_i32, %c0_i32_0, %c0_i32_1 : i32, i32, i32, i32
  }
  func.func @transform_11(%arg0: i32) -> (i32, i32, i32) {
    %c0_i32 = arith.constant 0 : i32
    %c0_i32_0 = arith.constant 0 : i32
    %c0_i32_1 = arith.constant 0 : i32
    return %arg0, %c0_i32, %c0_i32_0 : i32, i32, i32
  }
  func.func @transform_12(%arg0: i32) -> (i32, i32, i32) {
    %c0_i32 = arith.constant 0 : i32
    %c0_i32_0 = arith.constant 0 : i32
    %c0_i32_1 = arith.constant 0 : i32
    return %arg0, %c0_i32, %c0_i32_0 : i32, i32, i32
  }
  func.func @transform_13(%arg0: i32) -> (i32, i32, i32) {
    %c0_i32 = arith.constant 0 : i32
    %c0_i32_0 = arith.constant 0 : i32
    %c0_i32_1 = arith.constant 0 : i32
    return %arg0, %c0_i32, %c0_i32_0 : i32, i32, i32
  }
  func.func @transform_14(%arg0: i32) -> (i32, i32, i32) {
    %c0_i32 = arith.constant 0 : i32
    %c0_i32_0 = arith.constant 0 : i32
    %c0_i32_1 = arith.constant 0 : i32
    return %arg0, %c0_i32, %c0_i32_0 : i32, i32, i32
  }
  func.func @transform_15(%arg0: i32) -> (i32, i32, i32) {
    %c0_i32 = arith.constant 0 : i32
    %c0_i32_0 = arith.constant 0 : i32
    %c0_i32_1 = arith.constant 0 : i32
    return %arg0, %c0_i32, %c0_i32_0 : i32, i32, i32
  }
  func.func @transform_16(%arg0: i32) -> (i32, i32, i32) {
    %c0_i32 = arith.constant 0 : i32
    %c0_i32_0 = arith.constant 0 : i32
    %c0_i32_1 = arith.constant 0 : i32
    return %arg0, %c0_i32, %c0_i32_0 : i32, i32, i32
  }
  func.func @transform_17(%arg0: i32) -> (i32, i32) {
    %c0_i32 = arith.constant 0 : i32
    %c0_i32_0 = arith.constant 0 : i32
    %c0_i32_1 = arith.constant 0 : i32
    return %c0_i32, %c0_i32_0 : i32, i32
  }
  func.func @transform_18(%arg0: i32) -> (i32, i32) {
    %c0_i32 = arith.constant 0 : i32
    %c0_i32_0 = arith.constant 0 : i32
    %c0_i32_1 = arith.constant 0 : i32
    return %c0_i32, %c0_i32_0 : i32, i32
  }
}

</mosaic_0001>

<bundles_post_ra>
// kernel: tpu_custom_call.1
= control target key start
LH: loop header
LB: loop body
LE: loop exit
PB: predicated region body
PF: predicated region fallthrough
CT: control target
= control target key end

     0   :  { %s3978_s0 = inlined_call_operand.vmem [shape: s32[16,1], index: 0, kind: input, shape index: {}]   ;;  %s3979_s1 = inlined_call_operand.vmem [shape: f32[1,16], index: 1, kind: input, shape index: {}]   ;;  %s3980_s2 = inlined_call_operand.vmem [shape: s32[16,1], index: 2, kind: input, shape index: {}]   ;;  %s3981_s3 = inlined_call_operand.vmem [shape: s32[1,16], index: 3, kind: input, shape index: {}]   ;;  %s3982_s4 = inlined_call_operand.vmem [shape: f32[2,1], index: 4, kind: input, shape index: {}]   ;;  %s3983_s5 = inlined_call_operand.vmem [shape: f32[128,32], index: 5, kind: input, shape index: {}]   ;;  %s3984_s6 = inlined_call_operand.vmem [shape: f32[16,16], index: 6, kind: input, shape index: {}]   ;;  %s3985_s7 = inlined_call_operand.vmem [shape: f32[16,16], index: 7, kind: input, shape index: {}]   ;;  %s3986_s8 = inlined_call_operand.vmem [shape: f32[2,10,32,16], index: 8, kind: input, shape index: {}]   ;;  %s3987_s9 = inlined_call_operand.vmem [shape: f32[2,10,1,16], index: 9, kind: input, shape index: {}]   ;;  %s3988_s10 = inlined_call_operand.vmem [shape: f32[2,2,16,32], index: 10, kind: input, shape index: {}]   ;;  %s3989_s11 = inlined_call_operand.vmem [shape: f32[2,1,32], index: 11, kind: input, shape index: {}]   ;;  %s3990_s12 = inlined_call_operand.vmem [shape: f32[2,32,64], index: 12, kind: input, shape index: {}]   ;;  %s3991_s13 = inlined_call_operand.vmem [shape: f32[2,1,64], index: 13, kind: input, shape index: {}]   ;;  %s3992_s14 = inlined_call_operand.vmem [shape: f32[2,64,32], index: 14, kind: input, shape index: {}]   ;;  %s3993_s15 = inlined_call_operand.vmem [shape: f32[2,1,32], index: 15, kind: input, shape index: {}]   ;;  %s3994_s16 = inlined_call_operand.vmem [shape: f32[2,4,32], index: 16, kind: input, shape index: {}]   ;;  %s3995_s17 = inlined_call_operand.vmem [shape: f32[2,32], index: 17, kind: input, shape index: {}]   ;;  %s3996_s18 = inlined_call_operand.hbm [shape: f32[2,32], index: 18, kind: output, shape index: {}]  }
   0x1   :  { %4000 = sst [smem:[#allocation7_spill]] %s3978_s0 }
   0x2   :  { %4001 = sst [smem:[#allocation8_spill]] %s3979_s1 }
   0x3   :  { %4002 = sst [smem:[#allocation9_spill]] %s3980_s2 }
   0x4   :  { %4003 = sst [smem:[#allocation10_spill]] %s3981_s3 }
   0x5   :  { %4004 = sst [smem:[#allocation11_spill]] %s3982_s4 }
   0x6   :  { %4005 = sst [smem:[#allocation12_spill]] %s3986_s8 }
   0x7   :  { %4006 = sst [smem:[#allocation13_spill]] %s3987_s9 }
   0x8   :  { %4007 = sst [smem:[#allocation14_spill]] %s3988_s10 }
   0x9   :  { %4008 = sst [smem:[#allocation15_spill]] %s3995_s17 }
   0xa   :  { %4009 = sst [smem:[#allocation16_spill]] %s3996_s18 }
   0xb   :  { %23 = vsyncpa [#allocation4], 0  ;;  %s3554_s27 = smov 0  }
   0xc LB: > { %4010 = sst [smem:[#allocation6_spill]] %s3449_s27  ;;  %s3560_s28 = sadd.s32 4294967295, %s3449_s27   ;;  %s3449_s27 = sphi %s3554_s27, %s29_s27  }
   0xd   : > { %p2883_p0 = scmp.ge.s32.totalorder %s3449_s27, 1  ;;  %p580_p1 = scmp.lt.s32.totalorder %s3449_s27, 3 }
   0xf   : > { %p581_p2 = pnand %p2883_p0, %p580_p1 }
  0x10   : > { %p661_p3 = scmp.lt.s32.totalorder (!%p581_p2), %s3560_s28, 1  ;;  %s4011_s10 = sld [smem:[#allocation14_spill]] (!%p581_p2) }
  0x11   : > { %584 = sbr.rel (%p581_p2) target bundleno = 4022 (0xfb6), region = 92  ;;  %s4012_s8 = sld [smem:[#allocation12_spill]] (!%p581_p2) }
  0x12   : > { %s4013_s9 = sld [smem:[#allocation13_spill]] (!%p581_p2)  ;;  %p2892_p4 = scmp.ne.s32.totalorder (!%p581_p2), %s3560_s28, 0 }
  0x16   : > { %s3566_s29 = scalar_select %p661_p3, %s3560_s28, 1 }
  0x18   : > { %s3353_s30 = smul.u32 320, %s3566_s29  ;;  %s3005_s0 = sshll.u32 %s3566_s29, 5 }
  0x19   : > { %s3354_s19 = smul.u32 10, %s3566_s29  ;;  %s3574_s21 = scalar_lea.vmem %s4011_s10, %s3005_s0 }
  0x1a   : > { %s3579_s23 = scalar_lea.vmem %s4012_s8, %s3353_s30  ;;  %s3593_s1 = scalar_lea.vmem %s3990_s12, %s3005_s0 }
  0x1b   : > { %s3588_s17 = scalar_lea.vmem %s4013_s9, %s3354_s19  ;;  %s685_s22 = scalar_lea.vmem %s3991_s13, %s3566_s29 }
  0x1c   : > { %s3007_s30 = sshll.u32 %s3566_s29, 6  ;;  %s693_s18 = scalar_lea.vmem %s3993_s15, %s3566_s29 }
  0x1d   : > { %s3603_s24 = scalar_lea.vmem %s3992_s14, %s3007_s30  ;;  %s2891_s27 = sshll.u32 %s3566_s29, 2 }
  0x1e   : > { %s3613_s3 = scalar_lea.vmem %s3994_s16, %s2891_s27  ;;  %701 = sbr.rel (%p2892_p4) target bundleno = 363 (0x16b), region = 96 }
  0x1f   : > { %s4014_s0 = sld [smem:[#allocation7_spill]] (!%p2892_p4) }
  0x23   : > { %v733_v1 = vld [vmem:[%s3983_s5 + $0x78] sm:$0xff]  ;;  %v3451_v2 = vmov 0   ;;  %v732_v3 = vld [vmem:[%s3983_s5 + $0x70] sm:$0xff]  ;;  %v731_v4 = vld [vmem:[%s3983_s5 + $0x68] sm:$0xff]  ;;  %v704_v19 = vlaneseq  ;;  %v3452_v22 = vmov 1.0   ;;  %vm809_vm2 = vcmask 261120  }
  0x24   : > { %3377 = vset.pattern.permute.xlu0 %v3451_v2  ;;  %3129 = vmatprep.subr.mxu0 %v733_v1  ;;  %v730_v6 = vld [vmem:[%s3983_s5 + $0x60] sm:$0xff]  ;;  %v729_v7 = vld [vmem:[%s3983_s5 + $0x58] sm:$0xff]  ;;  %v728_v8 = vld [vmem:[%s3983_s5 + $0x50] sm:$0xff] }
  0x25   : > { %v702_v0 = vld [vmem:[%s4014_s0] sm:$0xff]  ;;  %3130 = vmatpush3.msra.mxu0 %v733_v1  ;;  %v703_v5 = vld [vmem:[%s4014_s0 + $0x8] sm:$0xff]  ;;  %v725_v11 = vld [vmem:[%s3983_s5 + $0x38] sm:$0xff]  ;;  %v705_v20 = vand.u32 127, %v704_v19 }
  0x26   : > { %707 = vperm.xlu0 %3377, %v702_v0   ;;  %3131 = vmatprep.subr.mxu0 %v732_v3  ;;  %v727_v9 = vld [vmem:[%s3983_s5 + $0x48] sm:$0xff]  ;;  %v726_v10 = vld [vmem:[%s3983_s5 + $0x40] sm:$0xff]  ;;  %v724_v12 = vld [vmem:[%s3983_s5 + $0x30] sm:$0xff] }
  0x27   : > { %3132 = vmatpush3.msra.mxu0 %v732_v3  ;;  %v723_v13 = vld [vmem:[%s3983_s5 + $0x28] sm:$0xff]  ;;  %v722_v14 = vld [vmem:[%s3983_s5 + $0x20] sm:$0xff]  ;;  %v721_v15 = vld [vmem:[%s3983_s5 + $0x18] sm:$0xff] }
  0x28   : > { %3133 = vmatprep.subr.mxu0 %v731_v4  ;;  %v720_v16 = vld [vmem:[%s3983_s5 + $0x10] sm:$0xff]  ;;  %v719_v17 = vld [vmem:[%s3983_s5 + $0x8] sm:$0xff]  ;;  %v718_v18 = vld [vmem:[%s3983_s5] sm:$0xff] }
  0x29   : > { %3134 = vmatpush3.msra.mxu0 %v731_v4 }
  0x2a   : > { %710 = vperm.xlu0 %3377, %v703_v5   ;;  %3135 = vmatprep.subr.mxu0 %v730_v6 }
  0x2b   : > { %3136 = vmatpush3.msra.mxu0 %v730_v6 }
  0x2c   : > { %3137 = vmatprep.subr.mxu0 %v729_v7 }
  0x2d   : > { %3138 = vmatpush3.msra.mxu0 %v729_v7 }
  0x2e   : > { %3139 = vmatprep.subr.mxu0 %v728_v8 }
  0x2f   : > { %3140 = vmatpush3.msra.mxu0 %v728_v8 }
  0x30   : > { %3141 = vmatprep.subr.mxu0 %v727_v9 }
  0x31   : > { %3142 = vmatpush3.msra.mxu0 %v727_v9 }
  0x32   : > { %3143 = vmatprep.subr.mxu0 %v726_v10 }
  0x33   : > { %3144 = vmatpush3.msra.mxu0 %v726_v10 }
  0x34   : > { %3145 = vmatprep.subr.mxu0 %v725_v11 }
  0x35   : > { %3146 = vmatpush3.msra.mxu0 %v725_v11 }
  0x36   : > { %3147 = vmatprep.subr.mxu0 %v724_v12 }
  0x37   : > { %3148 = vmatpush3.msra.mxu0 %v724_v12 }
  0x38   : > { %3149 = vmatprep.subr.mxu0 %v723_v13 }
  0x39   : > { %3150 = vmatpush3.msra.mxu0 %v723_v13 }
  0x3a   : > { %3151 = vmatprep.subr.mxu0 %v722_v14 }
  0x3b   : > { %3152 = vmatpush3.msra.mxu0 %v722_v14 }
  0x3c   : > { %3153 = vmatprep.subr.mxu0 %v721_v15 }
  0x3d   : > { %3154 = vmatpush3.msra.mxu0 %v721_v15 }
  0x3e   : > { %3155 = vmatprep.subr.mxu0 %v720_v16 }
  0x3f   : > { %3156 = vmatpush3.msra.mxu0 %v720_v16 }
  0x40   : > { %3157 = vmatprep.subr.mxu0 %v719_v17 }
  0x41   : > { %3158 = vmatpush3.msra.mxu0 %v719_v17 }
  0x42   : > { %3159 = vmatprep.subr.mxu0 %v718_v18 }
  0x43   : > { %3160 = vmatpush3.msra.mxu0 %v718_v18 }
  0xa1   : > { %v708_v21 = vpop.permute.xlu0 %707 }
  0xa2   : > { %vm712_vm0 = vcmp.eq.s32.totalorder %v705_v20, %v708_v21 }
  0xa3   : > { %3161 = vmatprep.mubr.msk.f32.mxu0 %vm712_vm0, %v3452_v22 }
  0xa5   : > { %v711_v23 = vpop.permute.xlu0 %710 }
  0xa6   : > { %vm713_vm1 = vcmp.eq.s32.totalorder %v705_v20, %v711_v23 }
  0xa7   : > { %3162 = vmatmul.mubr.msk.f32.vlgmr.msra.gmra.mxu0 %vm713_vm1, %v3452_v22 }
 0x167   : > { %v3163_v24 = vpop.f32.mrf.mxu0 }
 0x168   : > { %811 = vst.msk [vmem:[#allocation2 + $0x8] sm:$0xff] %vm809_vm2, %v3163_v24 }
 0x169   : > { %v800_v25 = vpop.f32.mrf.mxu0 }
 0x16a   : > { %810 = vst.msk [vmem:[#allocation2] sm:$0xff] %vm809_vm2, %v800_v25 }
 0x16b PF: > { %vm846_vm3 = vcmask 261120   ;;  %v890_v40 = vld [vmem:[%s3579_s23 + $0x18] sm:$0xff]  ;;  %v889_v42 = vld [vmem:[%s3579_s23 + $0x10] sm:$0xff]  ;;  %v888_v44 = vld [vmem:[%s3579_s23 + $0x8] sm:$0xff]  ;;  %v830_v54 = vlaneseq  ;;  %s4015_s26 = sld [smem:[#allocation9_spill]]  ;;  %v3453_v19 = vmov 0   ;;  %s4018_s19 = scalar_lea.vmem %s3989_s11, %s3566_s29 }
 0x16c   : > { %v2904_v41 = vld [vmem:[%s3579_s23 + $0x58] sm:$0xff]  ;;  %3164 = vmatprep.subr.mxu0 %v890_v40  ;;  %v2903_v43 = vld [vmem:[%s3579_s23 + $0x50] sm:$0xff]  ;;  %v2902_v45 = vld [vmem:[%s3579_s23 + $0x48] sm:$0xff]  ;;  %3379 = vset.pattern.permute.xlu1 %v3453_v19  ;;  %vm1343_vm4 = vcmask 130048   ;;  %s4016_s9 = sld [smem:[#allocation8_spill]]  ;;  %vm2511_vm11 = vcmask 523264  }
 0x16d   : > { %3175 = vmatprep.subr.mxu1 %v2904_v41  ;;  %3165 = vmatpush3.msra.mxu0 %v890_v40  ;;  %v887_v46 = vld [vmem:[%s3579_s23] sm:$0xff]  ;;  %v2912_v48 = vld [vmem:[%s3579_s23 + $0x98] sm:$0xff]  ;;  %v3692_v57 = vshrl.u32 %v830_v54, 7  ;;  %v2911_v7 = vld [vmem:[%s3579_s23 + $0x90] sm:$0xff]  ;;  %s4017_s27 = sld [smem:[#allocation10_spill]]  ;;  %p2998_p5 = scmp.ne.s32.totalorder %s3560_s28, 1 }
 0x16e   : > { %3176 = vmatpush3.msra.mxu1 %v2904_v41  ;;  %3166 = vmatprep.subr.mxu0 %v889_v42  ;;  %v2901_v47 = vld [vmem:[%s3579_s23 + $0x40] sm:$0xff]  ;;  %v2920_v49 = vld [vmem:[%s3579_s23 + $0xd8] sm:$0xff]  ;;  %v2919_v8 = vld [vmem:[%s3579_s23 + $0xd0] sm:$0xff]  ;;  %s4019_s4 = sld [smem:[#allocation11_spill]] (!%p2998_p5) }
 0x16f   : > { %v3672_v27 = vld [vmem:[#allocation2 + $0x8] sm:$0xff]  ;;  %3177 = vmatprep.subr.mxu1 %v2903_v43  ;;  %3167 = vmatpush3.msra.mxu0 %v889_v42  ;;  %v3695_v58 = vsub.s32 0, %v3692_v57  ;;  %v3698_v59 = vld [vmem:[%s3613_s3] sm:$0xf]  ;;  %v882_v60 = vsub.s32 1, %v3692_v57  ;;  %v2928_v13 = vld [vmem:[%s3579_s23 + $0x118] sm:$0xff] }
 0x170   : > { %v850_v29 = vsel %vm846_vm3, %v3672_v27, 0.0  ;;  %3178 = vmatpush3.msra.mxu1 %v2903_v43  ;;  %3168 = vmatprep.subr.mxu0 %v888_v44  ;;  %v2910_v9 = vld [vmem:[%s3579_s23 + $0x88] sm:$0xff]  ;;  %v2909_v11 = vld [vmem:[%s3579_s23 + $0x80] sm:$0xff]  ;;  %v2927_v14 = vld [vmem:[%s3579_s23 + $0x110] sm:$0xff]  ;;  %s4020_s3 = sld [smem:[#allocation15_spill]] (!%p2998_p5) }
 0x171   : > { %v3670_v26 = vld [vmem:[#allocation2] sm:$0xff]  ;;  %3179 = vmatprep.subr.mxu1 %v2902_v45  ;;  %3169 = vmatpush3.msra.mxu0 %v888_v44  ;;  %v877_v61 = vrot.slane %v3698_v59, %v3695_v58  ;;  %v883_v0 = vrot.slane %v3698_v59, %v882_v60  ;;  %v2918_v10 = vld [vmem:[%s3579_s23 + $0xc8] sm:$0xff] }
 0x172   : > { %v847_v28 = vsel %vm846_vm3, %v3670_v26, 0.0  ;;  %3180 = vmatpush3.msra.mxu1 %v2902_v45  ;;  %3170 = vmatprep.subr.mxu0 %v887_v46  ;;  %v2917_v12 = vld [vmem:[%s3579_s23 + $0xc0] sm:$0xff]  ;;  %v2926_v15 = vld [vmem:[%s3579_s23 + $0x108] sm:$0xff] }
 0x173   : > { %848 = vadd.xlane.f32.xlu0 %v847_v28  ;;  %3181 = vmatprep.subr.mxu1 %v2901_v47  ;;  %v2925_v16 = vld [vmem:[%s3579_s23 + $0x100] sm:$0xff]  ;;  %v814_v17 = vld [vmem:[%s4015_s26 + $0x8] sm:$0xff] }
 0x174   : > { %3171 = vmatpush3.msra.mxu0 %v887_v46  ;;  %3182 = vmatpush3.msra.mxu1 %v2901_v47  ;;  %v813_v18 = vld [vmem:[%s4015_s26] sm:$0xff]  ;;  %v2930_v43 = vld [vmem:[%s3588_s17 + $0x8] ss:$0 sm:$0xff] }
 0x175   : > { %3186 = vmatprep.subr.mxu0 %v2912_v48  ;;  %3197 = vmatprep.subr.mxu1 %v2920_v49  ;;  %v2914_v24 = vld [vmem:[%s3588_s17 + $0x4] ss:$0 sm:$0xff]  ;;  %v2898_v25 = vld [vmem:[%s3588_s17] ss:$0 sm:$0xff]  ;;  %v3768_v45 = vld [vmem:[%s3984_s6 + $0x8] sm:$0xff] }
 0x176   : > { %3378 = vset.pattern.permute.xlu0 %v3453_v19 }
 0x177   : > { %851 = vadd.xlane.f32.xlu0 %v850_v29 }
 0x18d   : > { %817 = vperm.xlu0 %3378, %v813_v18  }
 0x1fc   : > { %v849_v30 = vpop.xlane.xlu0 %848 }
 0x1fd   : > { %v854_v31 = vmul.f32 0.03125, %v849_v30 }
 0x1ff   : > { %v856_v32 = vsub.f32 %v3670_v26, %v854_v31 }
 0x200   : > { %v852_v33 = vpop.xlane.xlu0 %851 }
 0x201   : > { %v855_v34 = vmul.f32 0.03125, %v852_v33  ;;  %v858_v35 = vmul.f32 %v856_v32, %v856_v32  ;;  %v2922_v33 = vld [vmem:[%s3588_s17 + $0x6] ss:$0 sm:$0xff] }
 0x203   : > { %v857_v36 = vsub.f32 %v3672_v27, %v855_v34  ;;  %v860_v37 = vsel %vm846_vm3, %v858_v35, 0.0  ;;  %v3759_v35 = vld [vmem:[%s3985_s7] sm:$0xff] }
 0x204   : > { %861 = vadd.xlane.f32.xlu1 %v860_v37 }
 0x205   : > { %v859_v38 = vmul.f32 %v857_v36, %v857_v36 }
 0x207   : > { %v863_v39 = vsel %vm846_vm3, %v859_v38, 0.0 }
 0x208   : > { %864 = vadd.xlane.f32.xlu1 %v863_v39  ;;  %v2906_v39 = vld [vmem:[%s3588_s17 + $0x2] ss:$0 sm:$0xff]  ;;  %v818_v18 = vpop.permute.xlu0 %817 }
 0x219   : > { %820 = vperm.xlu1 %3379, %v814_v17  }
 0x28d   : > { %v862_v50 = vpop.xlane.xlu1 %861 }
 0x28e   : > { %v866_v51 = vmul.f32 0.03125, %v862_v50 }
 0x290   : > { %v868_v52 = vadd.f32 1e-05, %v866_v51 }
 0x291   : > { %v865_v53 = vpop.xlane.xlu1 %864 }
 0x292   : > { %3380 = vrsqrt.f32 %v868_v52  ;;  %v867_v55 = vmul.f32 0.03125, %v865_v53 }
 0x294   : > { %v869_v56 = vadd.f32 1e-05, %v867_v55 }
 0x295   : > { %v821_v17 = vpop.permute.xlu1 %820 }
 0x296   : > { %3382 = vrsqrt.f32 %v869_v56 }
 0x29f   : > { %v3381_v62 = vpop.eup %3380 }
 0x2a0   : > { %v872_v63 = vmul.f32 %v3381_v62, %v856_v32  ;;  %v3753_v32 = vld [vmem:[%s3984_s6] sm:$0xff] }
 0x2a2   : > { %v878_v1 = vmul.f32 %v877_v61, %v872_v63 }
 0x2a3   : > { %v3383_v2 = vpop.eup %3382 }
 0x2a4   : > { %v3706_v3 = vadd.f32 %v883_v0, %v878_v1  ;;  %v873_v4 = vmul.f32 %v3383_v2, %v857_v36  ;;  %v2953_v1 = vld [vmem:[%s3579_s23 + $0x78] sm:$0xff] }
 0x2a6   : > { %v879_v5 = vmul.f32 %v877_v61, %v873_v4  ;;  %3172 = vmatprep.mubr.msk.f32.mxu0 %vm846_vm3, %v3706_v3  ;;  %3183 = vmatprep.mubr.msk.f32.mxu1 %vm846_vm3, %v3706_v3 }
 0x2a8   : > { %v3712_v6 = vadd.f32 %v883_v0, %v879_v5  ;;  %v2952_v5 = vld [vmem:[%s3579_s23 + $0x70] sm:$0xff] }
 0x2aa   : > { %3173 = vmatmul.mubr.msk.f32.vlgmr.msra.gmra.mxu0 %vm846_vm3, %v3712_v6  ;;  %3184 = vmatmul.mubr.msk.f32.vlgmr.msra.gmra.mxu1 %vm846_vm3, %v3712_v6 }
 0x2ab   : > { %3187 = vmatpush3.msra.mxu0 %v2912_v48  ;;  %3198 = vmatpush3.msra.mxu1 %v2920_v49  ;;  %v3774_v49 = vld [vmem:[%s3985_s7 + $0x8] sm:$0xff] }
 0x2ac   : > { %3188 = vmatprep.subr.mxu0 %v2911_v7  ;;  %3194 = vmatprep.mubr.msk.f32.mxu0 %vm846_vm3, %v3706_v3 }
 0x2ad   : > { %3199 = vmatprep.subr.mxu1 %v2919_v8  ;;  %3205 = vmatprep.mubr.msk.f32.mxu1 %vm846_vm3, %v3706_v3 }
 0x2ae   : > { %3189 = vmatpush3.msra.mxu0 %v2911_v7  ;;  %3200 = vmatpush3.msra.mxu1 %v2919_v8  ;;  %v2951_v7 = vld [vmem:[%s3579_s23 + $0x68] sm:$0xff]  ;;  %v2950_v8 = vld [vmem:[%s3579_s23 + $0x60] sm:$0xff] }
 0x2af   : > { %3190 = vmatprep.subr.mxu0 %v2910_v9  ;;  %3201 = vmatprep.subr.mxu1 %v2918_v10 }
 0x2b0   : > { %3191 = vmatpush3.msra.mxu0 %v2910_v9  ;;  %3202 = vmatpush3.msra.mxu1 %v2918_v10  ;;  %v2969_v9 = vld [vmem:[%s3579_s23 + $0xf8] sm:$0xff]  ;;  %v2968_v10 = vld [vmem:[%s3579_s23 + $0xf0] sm:$0xff] }
 0x2b1   : > { %3192 = vmatprep.subr.mxu0 %v2909_v11  ;;  %3203 = vmatprep.subr.mxu1 %v2917_v12 }
 0x2b2   : > { %3193 = vmatpush3.msra.mxu0 %v2909_v11  ;;  %3204 = vmatpush3.msra.mxu1 %v2917_v12  ;;  %v2967_v11 = vld [vmem:[%s3579_s23 + $0xe8] sm:$0xff]  ;;  %v2966_v12 = vld [vmem:[%s3579_s23 + $0xe0] sm:$0xff] }
 0x2b3   : > { %3195 = vmatmul.mubr.msk.f32.vlgmr.msra.gmra.mxu0 %vm846_vm3, %v3712_v6  ;;  %3206 = vmatmul.mubr.msk.f32.vlgmr.msra.gmra.mxu1 %vm846_vm3, %v3712_v6 }
 0x2b4   : > { %3208 = vmatprep.subr.mxu0 %v2928_v13  ;;  %3216 = vmatprep.mubr.msk.f32.mxu0 %vm846_vm3, %v3706_v3 }
 0x2b5   : > { %3209 = vmatpush3.msra.mxu0 %v2928_v13  ;;  %v3806_v13 = vld [vmem:[%s4016_s9] sm:$0x1]  ;;  %s4021_s9 = sld [smem:[#allocation10_spill]] (!%p2998_p5) }
 0x2b6   : > { %3210 = vmatprep.subr.mxu0 %v2927_v14  ;;  %vm828_vm5 = vcmp.gt.f32.partialorder %v3806_v13, 0.5 }
 0x2b7   : > { %3211 = vmatpush3.msra.mxu0 %v2927_v14  ;;  %v829_v14 = vsel %vm828_vm5, 1, %v3453_v19 }
 0x2b8   : > { %3212 = vmatprep.subr.mxu0 %v2926_v15 }
 0x2b9   : > { %3213 = vmatpush3.msra.mxu0 %v2926_v15  ;;  %v833_v15 = vrot.slane %v829_v14, %v3695_v58  ;;  %v2971_v14 = vld [vmem:[%s3588_s17 + $0x7] ss:$0 sm:$0xff] }
 0x2ba   : > { %3214 = vmatprep.subr.mxu0 %v2925_v16 }
 0x2bb   : > { %3215 = vmatpush3.msra.mxu0 %v2925_v16  ;;  %v2897_v16 = vld [vmem:[%s4017_s27] ss:$0 sm:$0xff]  ;;  %vm834_vm7 = vcmp.eq.s32.totalorder %v833_v15, 1 }
 0x2bc   : > { %3217 = vmatmul.mubr.msk.f32.vlgmr.msra.gmra.mxu0 %vm846_vm3, %v3712_v6  ;;  %vm827_vm6 = vcmp.eq.s32.totalorder %v821_v17, %v2897_v16  ;;  %vm826_vm8 = vcmp.eq.s32.totalorder %v818_v18, %v2897_v16  ;;  %v2947_v17 = vld [vmem:[%s3588_s17 + $0x1] ss:$0 sm:$0xff] }
 0x2bd   : > { %vm836_vm9 = vmand %vm827_vm6, %vm834_vm7 }
 0x2be   : > { %vm835_vm10 = vmand %vm826_vm8, %vm834_vm7 }
 0x36a   : > { %v3174_v20 = vpop.f32.mrf.mxu0  ;;  %v3185_v21 = vpop.f32.mrf.mxu1 }
 0x36b   : > { %v1064_v44 = vadd.f32 %v3185_v21, %v2906_v39  ;;  %v976_v62 = vadd.f32 %v3174_v20, %v2898_v25  ;;  %v3454_v20 = vmov -1e+09  }
 0x36c   : > { %v970_v22 = vpop.f32.mrf.mxu0  ;;  %v1058_v23 = vpop.f32.mrf.mxu1  ;;  %v3814_v21 = vsel %vm836_vm9, 0.0, %v3454_v20 }
 0x36d   : > { %v971_v30 = vadd.f32 %v2898_v25, %v970_v22  ;;  %v1059_v47 = vadd.f32 %v2906_v39, %v1058_v23  ;;  %v1338_v51 = vmul.f32 %v1064_v44, %v3768_v45  ;;  %v1332_v2 = vmul.f32 %v976_v62, %v3768_v45  ;;  %v2961_v62 = vld [vmem:[%s3579_s23 + $0xb8] sm:$0xff] }
 0x36e   : > { %v3816_v23 = vsel %vm835_vm10, 0.0, %v3454_v20 }
 0x36f   : > { %v1331_v40 = vmul.f32 %v971_v30, %v3753_v32  ;;  %v1337_v54 = vmul.f32 %v1059_v47, %v3753_v32 }
 0x373   : > { %v3196_v28 = vpop.f32.mrf.mxu0  ;;  %v3207_v29 = vpop.f32.mrf.mxu1 }
 0x374   : > { %v1152_v31 = vadd.f32 %v3196_v28, %v2914_v24  ;;  %v1240_v55 = vadd.f32 %v3207_v29, %v2922_v33 }
 0x375   : > { %v1146_v34 = vpop.f32.mrf.mxu0  ;;  %v1234_v36 = vpop.f32.mrf.mxu1 }
 0x376   : > { %v1147_v37 = vadd.f32 %v2914_v24, %v1146_v34  ;;  %v1235_v38 = vadd.f32 %v2922_v33, %v1234_v36  ;;  %3226 = vmatprep.subr.mxu0 %v1152_v31  ;;  %v1334_v0 = vmul.f32 %v1240_v55, %v3774_v49  ;;  %v2944_v55 = vld [vmem:[%s3579_s23 + $0x30] sm:$0xff] }
 0x377   : > { %3227 = vmatpush3.msra.mxu0 %v1152_v31 }
 0x378   : > { %v1333_v41 = vmul.f32 %v1235_v38, %v3759_v35  ;;  %3228 = vmatprep.subr.mxu0 %v1147_v37  ;;  %v1336_v4 = vadd.f32 %v1334_v0, %v1332_v2  ;;  %v2959_v0 = vld [vmem:[%s3579_s23 + $0xa8] sm:$0xff]  ;;  %v2977_v2 = vld [vmem:[%s3579_s23 + $0x138] sm:$0xff] }
 0x379   : > { %3229 = vmatpush3.msra.mxu0 %v1147_v37 }
 0x37a   : > { %v1335_v42 = vadd.f32 %v1333_v41, %v1331_v40 }
 0x37c   : > { %v3218_v46 = vpop.f32.mrf.mxu0  ;;  %3223 = vmatprep.mubr.msk.f32.mxu1 %vm1343_vm4, %v1335_v42  ;;  %v1535_v42 = vld [vmem:[%s3574_s21 + $0x8] sm:$0xff] }
 0x37d   : > { %v1328_v48 = vadd.f32 %v3218_v46, %v2930_v43  ;;  %3233 = vmatprep.subr.mxu0 %v1535_v42 }
 0x37e   : > { %v1322_v50 = vpop.f32.mrf.mxu0 }
 0x37f   : > { %v1340_v52 = vmul.f32 %v1328_v48, %v3774_v49  ;;  %v1323_v53 = vadd.f32 %v2930_v43, %v1322_v50 }
 0x381   : > { %v1342_v56 = vadd.f32 %v1340_v52, %v1338_v51  ;;  %v1339_v61 = vmul.f32 %v1323_v53, %v3759_v35  ;;  %v1534_v51 = vld [vmem:[%s3574_s21] sm:$0xff]  ;;  %v2945_v52 = vld [vmem:[%s3579_s23 + $0x38] sm:$0xff] }
 0x383   : > { %v1341_v63 = vadd.f32 %v1339_v61, %v1337_v54  ;;  %3219 = vmatprep.subr.msk.mxu1 %vm1343_vm4, %v1342_v56  ;;  %v2942_v61 = vld [vmem:[%s3579_s23 + $0x20] sm:$0xff] }
 0x384   : > { %3220 = vmatpush3.xpose.msk.msra.mxu1 %vm1343_vm4, %v1342_v56  ;;  %v2943_v56 = vld [vmem:[%s3579_s23 + $0x28] sm:$0xff] }
 0x385   : > { %3221 = vmatprep.subr.msk.mxu1 %vm1343_vm4, %v1341_v63 }
 0x388   : > { %3222 = vmatpush3.xpose.msk.msra.mxu1 %vm1343_vm4, %v1341_v63  ;;  %v2960_v63 = vld [vmem:[%s3579_s23 + $0xb0] sm:$0xff] }
 0x389   : > { %3251 = vmatprep.subr.mxu1 %v2953_v1 }
 0x38b   : > { %3224 = vmatmul.mubr.msk.f32.vlgmr.msra.gmra.mxu1 %vm1343_vm4, %v1336_v4  ;;  %v2976_v4 = vld [vmem:[%s3579_s23 + $0x130] sm:$0xff] }
 0x38c   : > { %3252 = vmatpush3.msra.mxu1 %v2953_v1  ;;  %3259 = vmatprep.mubr.msk.f32.mxu1 %vm846_vm3, %v3706_v3  ;;  %v2958_v1 = vld [vmem:[%s3579_s23 + $0xa0] sm:$0xff] }
 0x38d   : > { %3253 = vmatprep.subr.mxu1 %v2952_v5 }
 0x38e   : > { %3254 = vmatpush3.msra.mxu1 %v2952_v5  ;;  %v2975_v5 = vld [vmem:[%s3579_s23 + $0x128] sm:$0xff] }
 0x38f   : > { %3255 = vmatprep.subr.mxu1 %v2951_v7 }
 0x390   : > { %3256 = vmatpush3.msra.mxu1 %v2951_v7  ;;  %v2974_v7 = vld [vmem:[%s3579_s23 + $0x120] sm:$0xff] }
 0x391   : > { %3257 = vmatprep.subr.mxu1 %v2950_v8 }
 0x392   : > { %3258 = vmatpush3.msra.mxu1 %v2950_v8 }
 0x393   : > { %3260 = vmatmul.mubr.msk.f32.vlgmr.msra.gmra.mxu1 %vm846_vm3, %v3712_v6  ;;  %3273 = vmatprep.subr.mxu1 %v2969_v9 }
 0x394   : > { %3274 = vmatpush3.msra.mxu1 %v2969_v9  ;;  %3281 = vmatprep.mubr.msk.f32.mxu1 %vm846_vm3, %v3706_v3 }
 0x395   : > { %3275 = vmatprep.subr.mxu1 %v2968_v10 }
 0x396   : > { %3276 = vmatpush3.msra.mxu1 %v2968_v10 }
 0x397   : > { %3277 = vmatprep.subr.mxu1 %v2967_v11 }
 0x398   : > { %3278 = vmatpush3.msra.mxu1 %v2967_v11 }
 0x399   : > { %3279 = vmatprep.subr.mxu1 %v2966_v12 }
 0x39a   : > { %3280 = vmatpush3.msra.mxu1 %v2966_v12 }
 0x39b   : > { %3282 = vmatmul.mubr.msk.f32.vlgmr.msra.gmra.mxu1 %vm846_vm3, %v3712_v6 }
 0x44b   : > { %v3225_v22 = vpop.f32.mrf.mxu1 }
 0x44c   : > { %v1428_v19 = vadd.f32 %v3225_v22, %v3814_v21 }
 0x44d   : > { %v1422_v24 = vpop.f32.mrf.mxu1 }
 0x44e   : > { %v1423_v25 = vadd.f32 %v1422_v24, %v3816_v23  ;;  %v1434_v28 = vsel %vm1343_vm4, %v1428_v19, -inf }
 0x44f   : > { %1435 = vmax.xlane.f32.xlu0 %v1434_v28 }
 0x450   : > { %v1431_v29 = vsel %vm1343_vm4, %v1423_v25, -inf }
 0x451   : > { %1432 = vmax.xlane.f32.xlu1 %v1431_v29 }
 0x453   : > { %v3261_v8 = vpop.f32.mrf.mxu1 }
 0x455   : > { %v1792_v9 = vpop.f32.mrf.mxu1 }
 0x45b   : > { %v3283_v10 = vpop.f32.mrf.mxu1 }
 0x4d8   : > { %v1436_v30 = vpop.xlane.xlu0 %1435 }
 0x4d9   : > { %v1438_v31 = vsub.f32 %v1428_v19, %v1436_v30  ;;  %v2963_v19 = vld [vmem:[%s3588_s17 + $0x5] ss:$0 sm:$0xff] }
 0x4da   : > { %v1433_v33 = vpop.xlane.xlu1 %1432 }
 0x4db   : > { %v1437_v34 = vsub.f32 %v1423_v25, %v1433_v33  ;;  %v1441_v36 = vmul.f32 1.442695, %v1438_v31  ;;  %v2955_v31 = vld [vmem:[%s3588_s17 + $0x3] ss:$0 sm:$0xff]  ;;  %v2979_v33 = vld [vmem:[%s3588_s17 + $0x9] ss:$0 sm:$0xff] }
 0x4dd   : > { %v1439_v37 = vmul.f32 1.442695, %v1437_v34  ;;  %v1798_v34 = vadd.f32 %v3261_v8, %v2955_v31 }
 0x4df   : > { %3384 = vpow2.f32 %v1439_v37  ;;  %v1793_v37 = vadd.f32 %v2955_v31, %v1792_v9 }
 0x4e0   : > { %3386 = vpow2.f32 %v1441_v36 }
 0x4ec   : > { %v3385_v38 = vpop.eup %3384 }
 0x4ed   : > { %v1443_v39 = vsel %vm1343_vm4, %v3385_v38, 0.0  ;;  %v3387_v40 = vpop.eup %3386 }
 0x4ee   : > { %1444 = vadd.xlane.f32.xlu1 %v1443_v39  ;;  %v1446_v41 = vsel %vm1343_vm4, %v3387_v40, 0.0 }
 0x4f2   : > { %1447 = vadd.xlane.f32.xlu1 %v1446_v41 }
 0x577   : > { %v1445_v43 = vpop.xlane.xlu1 %1444 }
 0x578   : > { %3388 = vrcp.f32 %v1445_v43  ;;  %v2071_v43 = vmul.f32 %v1793_v37, %v3753_v32 }
 0x57b   : > { %v1448_v44 = vpop.xlane.xlu1 %1447 }
 0x57c   : > { %3390 = vrcp.f32 %v1448_v44 }
 0x585   : > { %v3389_v46 = vpop.eup %3388 }
 0x586   : > { %v1451_v47 = vmul.f32 %v3389_v46, %v3385_v38 }
 0x588   : > { %3230 = vmatprep.mubr.msk.f32.mxu0 %vm1343_vm4, %v1451_v47 }
 0x589   : > { %v3391_v48 = vpop.eup %3390 }
 0x58a   : > { %v1452_v50 = vmul.f32 %v3391_v48, %v3387_v40  ;;  %v2072_v40 = vmul.f32 %v1798_v34, %v3768_v45  ;;  %v1974_v48 = vadd.f32 %v3283_v10, %v2971_v14 }
 0x58c   : > { %3231 = vmatmul.mubr.msk.f32.vlgmr.msra.gmra.mxu0 %vm1343_vm4, %v1452_v50 }
 0x58d   : > { %3234 = vmatpush3.msra.mxu0 %v1535_v42 }
 0x58e   : > { %3235 = vmatprep.subr.mxu0 %v1534_v51 }
 0x58f   : > { %3236 = vmatpush3.msra.mxu0 %v1534_v51 }
 0x590   : > { %3240 = vmatprep.subr.mxu0 %v2945_v52 }
 0x64c   : > { %v3232_v53 = vpop.f32.mrf.mxu0 }
 0x64e   : > { %v1525_v54 = vpop.f32.mrf.mxu0 }
 0x64f   : > { %3237 = vmatprep.mubr.msk.f32.mxu0 %vm1343_vm4, %v1525_v54 }
 0x650   : > { %3238 = vmatmul.mubr.msk.f32.vlgmr.msra.gmra.mxu0 %vm1343_vm4, %v3232_v53 }
 0x651   : > { %3241 = vmatpush3.msra.mxu0 %v2945_v52  ;;  %3248 = vmatprep.mubr.msk.f32.mxu0 %vm846_vm3, %v3706_v3  ;;  %v2068_v52 = vmul.f32 %v1974_v48, %v3774_v49 }
 0x652   : > { %3242 = vmatprep.subr.mxu0 %v2944_v55 }
 0x653   : > { %3243 = vmatpush3.msra.mxu0 %v2944_v55 }
 0x654   : > { %3244 = vmatprep.subr.mxu0 %v2943_v56 }
 0x655   : > { %3245 = vmatpush3.msra.mxu0 %v2943_v56 }
 0x656   : > { %3246 = vmatprep.subr.mxu0 %v2942_v61 }
 0x657   : > { %3247 = vmatpush3.msra.mxu0 %v2942_v61 }
 0x658   : > { %3249 = vmatmul.mubr.msk.f32.vlgmr.msra.gmra.mxu0 %vm846_vm3, %v3712_v6  ;;  %3262 = vmatprep.subr.mxu0 %v2961_v62 }
 0x659   : > { %3263 = vmatpush3.msra.mxu0 %v2961_v62  ;;  %3270 = vmatprep.mubr.msk.f32.mxu0 %vm846_vm3, %v3706_v3 }
 0x65a   : > { %3264 = vmatprep.subr.mxu0 %v2960_v63 }
 0x65b   : > { %3265 = vmatpush3.msra.mxu0 %v2960_v63 }
 0x65c   : > { %3266 = vmatprep.subr.mxu0 %v2959_v0 }
 0x65d   : > { %3267 = vmatpush3.msra.mxu0 %v2959_v0 }
 0x65e   : > { %3268 = vmatprep.subr.mxu0 %v2958_v1 }
 0x65f   : > { %3269 = vmatpush3.msra.mxu0 %v2958_v1 }
 0x660   : > { %3271 = vmatmul.mubr.msk.f32.vlgmr.msra.gmra.mxu0 %vm846_vm3, %v3712_v6  ;;  %3284 = vmatprep.subr.mxu0 %v2977_v2 }
 0x661   : > { %3285 = vmatpush3.msra.mxu0 %v2977_v2  ;;  %3292 = vmatprep.mubr.msk.f32.mxu0 %vm846_vm3, %v3706_v3  ;;  %v1968_v3 = vpop.f32.mrf.mxu1 }
 0x662   : > { %3286 = vmatprep.subr.mxu0 %v2976_v4  ;;  %v1969_v16 = vadd.f32 %v2971_v14, %v1968_v3 }
 0x663   : > { %3287 = vmatpush3.msra.mxu0 %v2976_v4 }
 0x664   : > { %3288 = vmatprep.subr.mxu0 %v2975_v5  ;;  %v2067_v22 = vmul.f32 %v1969_v16, %v3759_v35 }
 0x665   : > { %3289 = vmatpush3.msra.mxu0 %v2975_v5  ;;  %v2989_v5 = vld [vmem:[%s3574_s21 + $0x18] sm:$0xff] }
 0x666   : > { %3290 = vmatprep.subr.mxu0 %v2974_v7 }
 0x667   : > { %3291 = vmatpush3.msra.mxu0 %v2974_v7 }
 0x668   : > { %3293 = vmatmul.mubr.msk.f32.vlgmr.msra.gmra.mxu0 %vm846_vm3, %v3712_v6 }
 0x710   : > { %v3854_v11 = vpop.f32.mrf.mxu0 }
 0x712   : > { %v3856_v12 = vpop.f32.mrf.mxu0 }
 0x718   : > { %v3250_v15 = vpop.f32.mrf.mxu0 }
 0x719   : > { %v1710_v44 = vadd.f32 %v3250_v15, %v2947_v17  ;;  %v2988_v15 = vld [vmem:[%s3574_s21 + $0x10] sm:$0xff] }
 0x71a   : > { %v1704_v18 = vpop.f32.mrf.mxu0 }
 0x71b   : > { %v1705_v20 = vadd.f32 %v2947_v17, %v1704_v18  ;;  %v2066_v51 = vmul.f32 %v1710_v44, %v3768_v45  ;;  %v2941_v18 = vld [vmem:[%s4018_s19] ss:$0 sm:$0xff] }
 0x71d   : > { %v2065_v6 = vmul.f32 %v1705_v20, %v3753_v32  ;;  %v2070_v53 = vadd.f32 %v2068_v52, %v2066_v51  ;;  %v1624_v20 = vadd.f32 %v3854_v11, %v2941_v18  ;;  %v2383_v52 = vsub.s32 2, %v3692_v57 }
 0x71f   : > { %v2069_v24 = vadd.f32 %v2067_v22, %v2065_v6  ;;  %v1623_v6 = vadd.f32 %v2941_v18, %v3856_v12 }
 0x720   : > { %v3272_v25 = vpop.f32.mrf.mxu0 }
 0x721   : > { %v1886_v28 = vadd.f32 %v3272_v25, %v2963_v19  ;;  %3299 = vmatprep.mubr.msk.f32.mxu1 %vm1343_vm4, %v2069_v24 }
 0x722   : > { %v1880_v29 = vpop.f32.mrf.mxu0 }
 0x723   : > { %v1881_v30 = vadd.f32 %v2963_v19, %v1880_v29  ;;  %3302 = vmatprep.subr.mxu0 %v1886_v28 }
 0x724   : > { %3303 = vmatpush3.msra.mxu0 %v1886_v28 }
 0x725   : > { %3304 = vmatprep.subr.mxu0 %v1881_v30 }
 0x726   : > { %3305 = vmatpush3.msra.mxu0 %v1881_v30 }
 0x728   : > { %v3294_v36 = vpop.f32.mrf.mxu0 }
 0x729   : > { %v2062_v38 = vadd.f32 %v3294_v36, %v2979_v33 }
 0x72a   : > { %v2056_v39 = vpop.f32.mrf.mxu0 }
 0x72b   : > { %v2074_v41 = vmul.f32 %v2062_v38, %v3774_v49  ;;  %v2057_v42 = vadd.f32 %v2979_v33, %v2056_v39 }
 0x72d   : > { %v2076_v46 = vadd.f32 %v2074_v41, %v2072_v40  ;;  %v2073_v47 = vmul.f32 %v2057_v42, %v3759_v35  ;;  %v2396_v40 = vld [vmem:[%s3593_s1 + $0x18] sm:$0xff]  ;;  %v2395_v41 = vld [vmem:[%s3593_s1 + $0x10] sm:$0xff]  ;;  %v2394_v42 = vld [vmem:[%s3593_s1 + $0x8] sm:$0xff] }
 0x72e   : > { %3316 = vmatprep.subr.mxu0 %v2396_v40 }
 0x72f   : > { %v2075_v50 = vadd.f32 %v2073_v47, %v2071_v43  ;;  %3295 = vmatprep.subr.msk.mxu1 %vm1343_vm4, %v2076_v46  ;;  %v2393_v43 = vld [vmem:[%s3593_s1] sm:$0xff] }
 0x730   : > { %3296 = vmatpush3.xpose.msk.msra.mxu1 %vm1343_vm4, %v2076_v46 }
 0x731   : > { %3297 = vmatprep.subr.msk.mxu1 %vm1343_vm4, %v2075_v50 }
 0x734   : > { %3298 = vmatpush3.xpose.msk.msra.mxu1 %vm1343_vm4, %v2075_v50 }
 0x735   : > { %3309 = vmatprep.subr.mxu1 %v2989_v5 }
 0x737   : > { %3300 = vmatmul.mubr.msk.f32.vlgmr.msra.gmra.mxu1 %vm1343_vm4, %v2070_v53 }
 0x738   : > { %3310 = vmatpush3.msra.mxu1 %v2989_v5  ;;  %v2503_v5 = vld [vmem:[%s3603_s24] sm:$0xff] }
 0x739   : > { %3311 = vmatprep.subr.mxu1 %v2988_v15 }
 0x73a   : > { %3312 = vmatpush3.msra.mxu1 %v2988_v15 }
 0x7f7   : > { %v3301_v32 = vpop.f32.mrf.mxu1 }
 0x7f8   : > { %v2161_v55 = vadd.f32 %v3301_v32, %v3814_v21  ;;  %v2384_v32 = vrot.slane %v3698_v59, %v2383_v52 }
 0x7f9   : > { %v2155_v54 = vpop.f32.mrf.mxu1 }
 0x7fa   : > { %v2156_v35 = vadd.f32 %v2155_v54, %v3816_v23  ;;  %v2167_v45 = vsel %vm1343_vm4, %v2161_v55, -inf  ;;  %v2389_v54 = vsub.s32 3, %v3692_v57 }
 0x7fc   : > { %v2164_v56 = vsel %vm1343_vm4, %v2156_v35, -inf }
 0x7fd   : > { %2165 = vmax.xlane.f32.xlu1 %v2164_v56 }
 0x801   : > { %2168 = vmax.xlane.f32.xlu1 %v2167_v45 }
 0x886   : > { %v2166_v61 = vpop.xlane.xlu1 %2165 }
 0x887   : > { %v2170_v49 = vsub.f32 %v2156_v35, %v2166_v61  ;;  %v2390_v61 = vrot.slane %v3698_v59, %v2389_v54  ;;  %v2507_v59 = vld [vmem:[%s3603_s24 + $0x20] sm:$0xff] }
 0x889   : > { %v2172_v62 = vmul.f32 1.442695, %v2170_v49 }
 0x88a   : > { %v2169_v63 = vpop.xlane.xlu1 %2168 }
 0x88b   : > { %3392 = vpow2.f32 %v2172_v62  ;;  %v2171_v0 = vsub.f32 %v2161_v55, %v2169_v63 }
 0x88d   : > { %v2174_v1 = vmul.f32 1.442695, %v2171_v0  ;;  %v2510_v0 = vld [vmem:[%s3603_s24 + $0x38] sm:$0xff] }
 0x88e   : > { %3327 = vmatprep.subr.mxu1 %v2510_v0 }
 0x88f   : > { %3394 = vpow2.f32 %v2174_v1  ;;  %v2509_v1 = vld [vmem:[%s3603_s24 + $0x30] sm:$0xff] }
 0x898   : > { %v3393_v2 = vpop.eup %3392 }
 0x899   : > { %v2176_v23 = vsel %vm1343_vm4, %v3393_v2, 0.0 }
 0x89a   : > { %2177 = vadd.xlane.f32.xlu1 %v2176_v23  ;;  %v2506_v23 = vld [vmem:[%s3603_s24 + $0x18] sm:$0xff] }
 0x89c   : > { %v3395_v21 = vpop.eup %3394 }
 0x89d   : > { %v2179_v4 = vsel %vm1343_vm4, %v3395_v21, 0.0 }
 0x89e   : > { %2180 = vadd.xlane.f32.xlu1 %v2179_v4  ;;  %v2504_v4 = vld [vmem:[%s3603_s24 + $0x8] sm:$0xff] }
 0x923   : > { %v2178_v7 = vpop.xlane.xlu1 %2177 }
 0x924   : > { %3396 = vrcp.f32 %v2178_v7  ;;  %v2992_v7 = vld [vmem:[%s685_s22] ss:$0 sm:$0xff] }
 0x927   : > { %v2181_v8 = vpop.xlane.xlu1 %2180 }
 0x928   : > { %3398 = vrcp.f32 %v2181_v8 }
 0x931   : > { %v3397_v9 = vpop.eup %3396 }
 0x932   : > { %v2184_v10 = vmul.f32 %v3397_v9, %v3393_v2  ;;  %v2508_v2 = vld [vmem:[%s3603_s24 + $0x28] sm:$0xff] }
 0x934   : > { %3306 = vmatprep.mubr.msk.f32.mxu0 %vm1343_vm4, %v2184_v10 }
 0x935   : > { %v3399_v3 = vpop.eup %3398 }
 0x936   : > { %v2185_v14 = vmul.f32 %v3399_v3, %v3395_v21  ;;  %v2505_v21 = vld [vmem:[%s3603_s24 + $0x10] sm:$0xff] }
 0x938   : > { %3307 = vmatmul.mubr.msk.f32.vlgmr.msra.gmra.mxu0 %vm1343_vm4, %v2185_v14 }
 0x939   : > { %3317 = vmatpush3.msra.mxu0 %v2396_v40 }
 0x93a   : > { %3318 = vmatprep.subr.mxu0 %v2395_v41 }
 0x93b   : > { %3319 = vmatpush3.msra.mxu0 %v2395_v41 }
 0x93c   : > { %3320 = vmatprep.subr.mxu0 %v2394_v42 }
 0x93d   : > { %3321 = vmatpush3.msra.mxu0 %v2394_v42 }
 0x93e   : > { %3322 = vmatprep.subr.mxu0 %v2393_v43 }
 0x93f   : > { %3323 = vmatpush3.msra.mxu0 %v2393_v43 }
 0x9f8   : > { %v3308_v16 = vpop.f32.mrf.mxu0 }
 0x9fa   : > { %v2258_v17 = vpop.f32.mrf.mxu0 }
 0x9fb   : > { %3313 = vmatprep.mubr.msk.f32.mxu1 %vm1343_vm4, %v2258_v17 }
 0x9fc   : > { %3314 = vmatmul.mubr.msk.f32.vlgmr.msra.gmra.mxu1 %vm1343_vm4, %v3308_v16 }
 0x9fd   : > { %3328 = vmatpush3.msra.mxu1 %v2510_v0 }
 0x9fe   : > { %3329 = vmatprep.subr.mxu1 %v2509_v1 }
 0x9ff   : > { %3330 = vmatpush3.msra.mxu1 %v2509_v1 }
 0xa00   : > { %3331 = vmatprep.subr.mxu1 %v2508_v2 }
 0xa01   : > { %3332 = vmatpush3.msra.mxu1 %v2508_v2 }
 0xa02   : > { %3333 = vmatprep.subr.mxu1 %v2507_v59 }
 0xa03   : > { %3334 = vmatpush3.msra.mxu1 %v2507_v59 }
 0xa04   : > { %3335 = vmatprep.subr.mxu1 %v2506_v23 }
 0xa05   : > { %3336 = vmatpush3.msra.mxu1 %v2506_v23 }
 0xa06   : > { %3337 = vmatprep.subr.mxu1 %v2505_v21 }
 0xa07   : > { %3338 = vmatpush3.msra.mxu1 %v2505_v21 }
 0xa08   : > { %3339 = vmatprep.subr.mxu1 %v2504_v4 }
 0xa09   : > { %3340 = vmatpush3.msra.mxu1 %v2504_v4 }
 0xa0a   : > { %3341 = vmatprep.subr.mxu1 %v2503_v5 }
 0xa0b   : > { %3342 = vmatpush3.msra.mxu1 %v2503_v5 }
 0xabc   : > { %v3315_v22 = vpop.f32.mrf.mxu1 }
 0xabd   : > { %v2352_v19 = vadd.f32 %v3315_v22, %v1624_v20 }
 0xabe   : > { %v2342_v24 = vpop.f32.mrf.mxu1 }
 0xabf   : > { %v3897_v25 = vadd.f32 %v2352_v19, %v3672_v27  ;;  %v2351_v28 = vadd.f32 %v2342_v24, %v1623_v6 }
 0xac1   : > { %v3900_v29 = vadd.f32 %v2351_v28, %v3670_v26  ;;  %v2358_v30 = vsel %vm846_vm3, %v3897_v25, 0.0 }
 0xac2   : > { %2359 = vadd.xlane.f32.xlu1 %v2358_v30 }
 0xac3   : > { %v2355_v11 = vsel %vm846_vm3, %v3900_v29, 0.0 }
 0xac4   : > { %2356 = vadd.xlane.f32.xlu0 %v2355_v11 }
 0xb4b   : > { %v2360_v12 = vpop.xlane.xlu1 %2359 }
 0xb4c   : > { %v2362_v31 = vmul.f32 0.03125, %v2360_v12 }
 0xb4d   : > { %v2357_v33 = vpop.xlane.xlu0 %2356 }
 0xb4e   : > { %v2364_v27 = vsub.f32 %v3897_v25, %v2362_v31  ;;  %v2361_v34 = vmul.f32 0.03125, %v2357_v33 }
 0xb50   : > { %v2363_v26 = vsub.f32 %v3900_v29, %v2361_v34  ;;  %v2366_v36 = vmul.f32 %v2364_v27, %v2364_v27 }
 0xb52   : > { %v2370_v37 = vsel %vm846_vm3, %v2366_v36, 0.0  ;;  %v2365_v38 = vmul.f32 %v2363_v26, %v2363_v26  ;;  %v2997_v36 = vld [vmem:[%s693_s18] ss:$0 sm:$0xff] }
 0xb53   : > { %2371 = vadd.xlane.f32.xlu1 %v2370_v37 }
 0xb54   : > { %v2367_v39 = vsel %vm846_vm3, %v2365_v38, 0.0 }
 0xb55   : > { %2368 = vadd.xlane.f32.xlu0 %v2367_v39 }
 0xbdc   : > { %v2372_v44 = vpop.xlane.xlu1 %2371 }
 0xbdd   : > { %v2374_v46 = vmul.f32 0.03125, %v2372_v44 }
 0xbde   : > { %v2369_v47 = vpop.xlane.xlu0 %2368 }
 0xbdf   : > { %v2376_v48 = vadd.f32 1e-05, %v2374_v46  ;;  %v2373_v50 = vmul.f32 0.03125, %v2369_v47 }
 0xbe1   : > { %3400 = vrsqrt.f32 %v2376_v48  ;;  %v2375_v51 = vadd.f32 1e-05, %v2373_v50 }
 0xbe3   : > { %3402 = vrsqrt.f32 %v2375_v51 }
 0xbee   : > { %v3401_v53 = vpop.eup %3400 }
 0xbef   : > { %v2380_v35 = vmul.f32 %v3401_v53, %v2364_v27 }
 0xbf0   : > { %v3403_v55 = vpop.eup %3402 }
 0xbf1   : > { %v2379_v56 = vmul.f32 %v3403_v55, %v2363_v26  ;;  %v2386_v45 = vmul.f32 %v2384_v32, %v2380_v35 }
 0xbf3   : > { %v2385_v49 = vmul.f32 %v2384_v32, %v2379_v56  ;;  %v2392_v63 = vadd.f32 %v2390_v61, %v2386_v45 }
 0xbf5   : > { %v2391_v62 = vadd.f32 %v2390_v61, %v2385_v49 }
 0xbf7   : > { %3324 = vmatprep.mubr.msk.f32.mxu0 %vm846_vm3, %v2391_v62 }
 0xbf8   : > { %3325 = vmatmul.mubr.msk.f32.vlgmr.msra.gmra.mxu0 %vm846_vm3, %v2392_v63 }
 0xcb8   : > { %v3326_v8 = vpop.f32.mrf.mxu0 }
 0xcb9   : > { %v2482_v9 = vadd.f32 %v3326_v8, %v2992_v7 }
 0xcba   : > { %v2476_v10 = vpop.f32.mrf.mxu0 }
 0xcbb   : > { %v2486_v3 = vmul.f32 %v2482_v9, %v2482_v9  ;;  %v2477_v14 = vadd.f32 %v2992_v7, %v2476_v10 }
 0xcbd   : > { %v2488_v15 = vmul.f32 %v2486_v3, %v2482_v9  ;;  %v2485_v16 = vmul.f32 %v2477_v14, %v2477_v14 }
 0xcbf   : > { %v2490_v17 = vmul.f32 0.044715, %v2488_v15  ;;  %v2487_v18 = vmul.f32 %v2485_v16, %v2477_v14 }
 0xcc1   : > { %v2492_v20 = vadd.f32 %v2490_v17, %v2482_v9  ;;  %v2489_v22 = vmul.f32 0.044715, %v2487_v18 }
 0xcc3   : > { %v2494_v6 = vmul.f32 0.7978846, %v2492_v20  ;;  %v2491_v19 = vadd.f32 %v2489_v22, %v2477_v14 }
 0xcc5   : > { %3404 = vtanh.f32 %v2494_v6  ;;  %v2493_v24 = vmul.f32 0.7978846, %v2491_v19 }
 0xcc7   : > { %3406 = vtanh.f32 %v2493_v24 }
 0xcd2   : > { %v3405_v28 = vpop.eup %3404 }
 0xcd3   : > { %v2498_v30 = vadd.f32 1.0, %v3405_v28 }
 0xcd4   : > { %v3407_v11 = vpop.eup %3406 }
 0xcd5   : > { %v2497_v12 = vadd.f32 1.0, %v3407_v11  ;;  %v2500_v31 = vmul.f32 0.5, %v2498_v30 }
 0xcd7   : > { %v2499_v33 = vmul.f32 0.5, %v2497_v12  ;;  %v2502_v34 = vmul.f32 %v2500_v31, %v2482_v9 }
 0xcd9   : > { %v2501_v27 = vmul.f32 %v2499_v33, %v2477_v14 }
 0xcdb   : > { %3343 = vmatprep.mubr.msk.f32.mxu1 %vm2511_vm11, %v2501_v27 }
 0xcdc   : > { %3344 = vmatmul.mubr.msk.f32.vlgmr.msra.gmra.mxu1 %vm2511_vm11, %v2502_v34 }
 0xd9c   : > { %v3345_v26 = vpop.f32.mrf.mxu1 }
 0xd9d   : > { %v2594_v37 = vadd.f32 %v3345_v26, %v3897_v25 }
 0xd9e   : > { %v2584_v38 = vpop.f32.mrf.mxu1 }
 0xd9f   : > { %v2603_v39 = vadd.f32 %v2997_v36, %v2594_v37  ;;  %v2593_v40 = vadd.f32 %v2584_v38, %v3900_v29  ;;  %2609 = sbr.rel (%p2998_p5) target bundleno = 4001 (0xfa1), region = 100 }
 0xda1   : > { %2605 = vst.msk [vmem:[#allocation2 + $0x8] sm:$0xff] %vm846_vm3, %v2603_v39  ;;  %v2602_v41 = vadd.f32 %v2997_v36, %v2593_v40 }
 0xda3   : > { %2604 = vst.msk [vmem:[#allocation2] sm:$0xff] %vm846_vm3, %v2602_v41 }
 0xda4   : > { %v2614_v42 = vsel %vm846_vm3, %v2603_v39, 0.0  ;;  %v2611_v43 = vsel %vm846_vm3, %v2602_v41, 0.0  ;;  %v3455_v32 = vmov 0.0   ;;  %vm3456_vm12 = vmmov 0   ;;  %v2737_v54 = vld [vmem:[%s4019_s4] sm:$0x3] }
 0xda5   : > { %2615 = vadd.xlane.f32.xlu0 %v2614_v42  ;;  %3346 = vmatprep.subr.mxu0 %v3455_v32  ;;  %v3457_v35 = vmov 0   ;;  %v2610_v63 = vld [vmem:[%s4020_s3] sm:$0x3]  ;;  %v2661_v8 = vrot.slane %v3806_v13, %v3695_v58  ;;  %vm2745_vm14 = vcmask 254976  }
 0xda6   : > { %3350 = vmatprep.mubr.msk.f32.mxu0 %vm3456_vm12, %v3455_v32  ;;  %3408 = vset.pattern.permute.xlu0 %v3457_v35  ;;  %v2640_v0 = vrot.slane %v2610_v63, %v3695_v58  ;;  %v2646_v59 = vrot.slane %v2610_v63, %v882_v60  ;;  %v2999_v21 = vld [vmem:[%s4021_s9] ss:$0 sm:$0xff] }
 0xda7   : > { %vm2656_vm13 = vcmp.eq.s32.totalorder %v3692_v57, %v2999_v21 }
 0xda8   : > { %v2663_v3 = vsel %vm2656_vm13, %v2661_v8, 0.0 }
 0xda9   : > { %2612 = vadd.xlane.f32.xlu0 %v2611_v43 }
 0xdbf   : > { %2740 = vperm.xlu0 %3408, %v2737_v54  }
 0xe2e   : > { %v2616_v44 = vpop.xlane.xlu0 %2615 }
 0xe2f   : > { %v2618_v25 = vmul.f32 0.03125, %v2616_v44 }
 0xe31   : > { %v2620_v46 = vsub.f32 %v2603_v39, %v2618_v25 }
 0xe32   : > { %v2613_v47 = vpop.xlane.xlu0 %2612 }
 0xe33   : > { %v2617_v48 = vmul.f32 0.03125, %v2613_v47  ;;  %v2622_v29 = vmul.f32 %v2620_v46, %v2620_v46 }
 0xe35   : > { %v2619_v50 = vsub.f32 %v2602_v41, %v2617_v48  ;;  %v2626_v51 = vsel %vm846_vm3, %v2622_v29, 0.0 }
 0xe36   : > { %2627 = vadd.xlane.f32.xlu1 %v2626_v51 }
 0xe37   : > { %v2621_v52 = vmul.f32 %v2619_v50, %v2619_v50 }
 0xe39   : > { %v2623_v53 = vsel %vm846_vm3, %v2621_v52, 0.0 }
 0xe3a   : > { %2624 = vadd.xlane.f32.xlu1 %v2623_v53  ;;  %v2741_v60 = vpop.permute.xlu0 %2740 }
 0xebf   : > { %v2628_v55 = vpop.xlane.xlu1 %2627 }
 0xec0   : > { %v2630_v56 = vmul.f32 0.03125, %v2628_v55 }
 0xec2   : > { %v2632_v45 = vadd.f32 1e-05, %v2630_v56 }
 0xec3   : > { %v2625_v61 = vpop.xlane.xlu1 %2624 }
 0xec4   : > { %3409 = vrsqrt.f32 %v2632_v45  ;;  %v2629_v49 = vmul.f32 0.03125, %v2625_v61 }
 0xec6   : > { %v2631_v62 = vadd.f32 1e-05, %v2629_v49 }
 0xec8   : > { %3411 = vrsqrt.f32 %v2631_v62 }
 0xec9   : > { %3413 = vrcp.f32 %v2741_v60 }
 0xed1   : > { %v3410_v1 = vpop.eup %3409 }
 0xed2   : > { %v2636_v2 = vmul.f32 %v3410_v1, %v2620_v46 }
 0xed4   : > { %v2642_v23 = vmul.f32 %v2640_v0, %v2636_v2 }
 0xed5   : > { %v3412_v4 = vpop.eup %3411 }
 0xed6   : > { %v2648_v5 = vadd.f32 %v2646_v59, %v2642_v23  ;;  %v2635_v7 = vmul.f32 %v3412_v4, %v2619_v50  ;;  %v3414_v14 = vpop.eup %3413 }
 0xed8   : > { %3347 = vmatpush3.msra.mxu0 %v2648_v5  ;;  %v2641_v9 = vmul.f32 %v2640_v0, %v2635_v7 }
 0xed9   : > { %3348 = vmatprep.subr.mxu0 %v3455_v32 }
 0xeda   : > { %v2647_v10 = vadd.f32 %v2646_v59, %v2641_v9 }
 0xedc   : > { %3349 = vmatpush3.msra.mxu0 %v2647_v10 }
 0xedd   : > { %3351 = vmatmul.mubr.msk.f32.vlgmr.msra.gmra.mxu0 %vm1343_vm4, %v2663_v3 }
 0xf9d   : > { %v2733_v15 = vpop.f32.mrf.mxu0 }
 0xf9e   : > { %v2744_v16 = vmul.f32 %v3414_v14, %v2733_v15 }
 0xf9f   : > { %v3352_v17 = vpop.f32.mrf.mxu0 }
 0xfa0   : > { %2746 = vst.msk [vmem:[#allocation3] sm:$0x3] %vm2745_vm14, %v2744_v16 }
 0xfa1 PF: > { %p3359_p6 = scmp.eq.s32.totalorder %s3560_s28, 1  ;;  %s3458_s2 = smov [#allocation3]  }
 0xfa2   : > { %s2754_s25 = sshll.u32 %s3458_s2, 4  ;;  %s2755_s25 = int_to_ptr.vmem [resolvable:$true] %s2754_s25 }
 0xfa3   : > { %s3415_s27 = scalar_lea.vmem %s2755_s25, 32  ;;  %p3422_p10 = scmp.lt.s32.totalorder %s2755_s25, %s2755_s25 }
 0xfa4   : > { %p3416_p7 = scmp.ne.s32.totalorder %s2755_s25, %s3415_s27  ;;  %p3423_p11 = scmp.lt.s32.totalorder %s3415_s27, %s3415_s27 }
 0xfa6   : > { %p3417_p8 = pnand %p3416_p7, %p3359_p6  ;;  %p3424_p12 = por %p3423_p11, %p3422_p10 }
 0xfa8   : > { %p3418_p9 = pneg %p3417_p8 }
 0xfaa   : > { %p3425_p13 = pnand %p3424_p12, %p3418_p9 }
 0xfac   : > { %3428 = shalt.err (!%p3425_p13)
}
 0xfad   : > { %s4022_s19 = sld [smem:[#allocation16_spill]] }
 0xfb3   : > { %3356 = dma.vmem_to_hbm [thread:$0]  (%p3359_p6), %s2755_s25, 32, %s4022_s19, [#allocation4]  }
 0xfb4   : > { %3444 = dma.done.wait (%p3359_p6), [#allocation4], 32  }
 0xfb5   : > { %3446 = vsyncadd (%p3359_p6), [#allocation4], 4294967264 }
 0xfb6 PF: > { %s4023_s21 = sld [smem:[#allocation6_spill]] }
 0xfbc   : > { %s29_s27 = sadd.s32 1, %s4023_s21  }
 0xfbd   : > { %p26_p0 = scmp.ge.s32.totalorder %s29_s27, 4  }
 0xfbf   :  { %28 = sbr.rel (!%p26_p0) target bundleno = 12 (0xc), region = 170 }
 0xfc4   :  { %2767 = vsyncpa [#allocation4], 1 }
 0xfc5   :  { %2769 = vsyncpa [#allocation4 + $0x1], 1 }

</bundles_post_ra>
